<compile_context>
chip_gen: v5e
topology: v5e:2x2
jax: 0.10.0
libtpu: 0.0.40
codegen_flags: <defaults>
</compile_context>

<pallas_src>
import functools

import jax
import jax.numpy as jnp
import numpy as np
from jax.experimental import pallas as pl
from jax.experimental.pallas import tpu as pltpu


# ----------------------------------------------------------------------------
# Fused kernel: whole GCN block for one batch element.
#   x_ref      : (1, Cin, H*W)
#   w*_ref     : (Cout, K*Cin) or (Cout, K*Cout)  flattened taps (col = t*C + c)
#   b*_ref     : (Cout, 1)
#   wmask_ref  : (K1, H*W)    per-tap column-validity mask for the (1,K1) conv
#   o_ref      : (1, Cout, H*W)
#   padh_ref   : (Cmax, H*W + 2*(K0//2)*W)  VMEM scratch, halo for (K0,1) conv
#   padw_ref   : (Cmax, H*W + 2*(K1//2))    VMEM scratch, halo for (1,K1) conv
#   stack_ref  : (Rmax, H*W)                VMEM scratch, fused-tap stack
# ----------------------------------------------------------------------------
def _gcn_kernel(x_ref, wl1_ref, bl1_ref, wl2_ref, bl2_ref,
                wr1_ref, br1_ref, wr2_ref, br2_ref, wmask_ref,
                o_ref,
                padh_ref, padw_ref, stack_ref,
                *, Cin, Cout, H, W, K0, K1):
    HW = H * W
    f32 = jnp.float32

    # Zero the halo scratch once; only their interiors are written below, so
    # the border (zero-padding) columns stay zero for every conv reusing them.
    padh_ref[...] = jnp.zeros(padh_ref.shape, f32)
    padw_ref[...] = jnp.zeros(padw_ref.shape, f32)

    def conv_h(val, C, w_ref, b_ref, K):
        """(K,1) conv: a shift along H is a shift by multiples of W in the
        flattened spatial index; halo handled by the zero-padded scratch."""
        pad = K // 2
        padh_ref[0:C, pad * W: pad * W + HW] = val
        for t in range(K):
            # slice element p == val[c, p + (t - pad) * W], zero outside [0, HW)
            stack_ref[t * C:(t + 1) * C, :] = padh_ref[0:C, t * W: t * W + HW]
        acc = jnp.dot(w_ref[...], stack_ref[0:K * C, :],
                      preferred_element_type=f32)
        return acc + b_ref[...]

    def conv_w(val, C, w_ref, b_ref, K):
        """(1,K) conv: a shift along W is a shift by (t - pad) in the flattened
        index; the precomputed mask zeroes taps that would cross a row."""
        pad = K // 2
        padw_ref[0:C, pad: pad + HW] = val
        for t in range(K):
            shifted = padw_ref[0:C, t: t + HW]            # val[c, p + t - pad]
            stack_ref[t * C:(t + 1) * C, :] = shifted * wmask_ref[t:t + 1, :]
        acc = jnp.dot(w_ref[...], stack_ref[0:K * C, :],
                      preferred_element_type=f32)
        return acc + b_ref[...]

    x = x_ref[0]                                          # (Cin, H*W)
    left = conv_h(x, Cin, wl1_ref, bl1_ref, K0)           # (Cout, H*W)
    left = conv_w(left, Cout, wl2_ref, bl2_ref, K1)
    right = conv_w(x, Cin, wr1_ref, br1_ref, K1)
    right = conv_h(right, Cout, wr2_ref, br2_ref, K0)
    o_ref[0] = (left + right).astype(o_ref.dtype)         # fused branch add


# ----------------------------------------------------------------------------
# Weight preprocessing: PyTorch (Cout, Cin, K, 1) / (Cout, Cin, 1, K)
#   -> (Cout, K*Cin) with column order t*Cin + ci (matches in-kernel stacking).
# ----------------------------------------------------------------------------
def _flatten_weight(w_pt):
    Cout, Cin = w_pt.shape[0], w_pt.shape[1]
    if w_pt.shape[3] == 1:                 # (K, 1) separable kernel
        w = w_pt[:, :, :, 0]               # (Cout, Cin, K)
    else:                                  # (1, K) separable kernel
        w = w_pt[:, :, 0, :]
    K = w.shape[2]
    wflat = jnp.transpose(w, (0, 2, 1)).reshape(Cout, K * Cin)
    return wflat.astype(jnp.float32), K


# ----------------------------------------------------------------------------
# GlobalConvolutionBlock forward.  x: NCHW float32; params: PyTorch-shaped.
# ----------------------------------------------------------------------------
def global_convolution_block(x_nchw, params):
    N, Cin, H, W = x_nchw.shape
    Cout = params["bl1"].shape[0]
    HW = H * W

    wl1, K0 = _flatten_weight(params["wl1"])
    wl2, K1 = _flatten_weight(params["wl2"])
    wr1, K1b = _flatten_weight(params["wr1"])
    wr2, K0b = _flatten_weight(params["wr2"])
    assert (K0, K1) == (K0b, K1b)
    # PyTorch pad=k//2 only keeps H,W unchanged for odd k; even k is unsupported.
    assert K0 % 2 == 1 and K1 % 2 == 1, "only odd GCN kernel sizes supported"
    pad0, pad1 = K0 // 2, K1 // 2

    bl1 = params["bl1"].reshape(Cout, 1).astype(jnp.float32)
    bl2 = params["bl2"].reshape(Cout, 1).astype(jnp.float32)
    br1 = params["br1"].reshape(Cout, 1).astype(jnp.float32)
    br2 = params["br2"].reshape(Cout, 1).astype(jnp.float32)

    # Column-validity mask for the (1,K1) conv: tap t may only read inside its
    # own image row, i.e. 0 <= w + (t - pad1) < W.  Static -> built on host.
    col = np.tile(np.arange(W), H)                                    # (HW,)
    wmask = np.stack([((col + (t - pad1) >= 0) & (col + (t - pad1) < W))
                      for t in range(K1)]).astype(np.float32)         # (K1, HW)
    wmask = jnp.asarray(wmask)

    x2d = x_nchw.reshape(N, Cin, HW).astype(jnp.float32)  # free, row-major

    Cmax = max(Cin, Cout)
    Rmax = max(K0 * Cin, K0 * Cout, K1 * Cin, K1 * Cout)

    kernel = functools.partial(_gcn_kernel, Cin=Cin, Cout=Cout, H=H, W=W,
                               K0=K0, K1=K1)
    wspec = lambda n: (0, 0)

    out2d = pl.pallas_call(
        kernel,
        out_shape=jax.ShapeDtypeStruct((N, Cout, HW), jnp.float32),
        grid=(N,),
        in_specs=[
            pl.BlockSpec((1, Cin, HW), lambda n: (n, 0, 0)),
            pl.BlockSpec((Cout, K0 * Cin), wspec),
            pl.BlockSpec((Cout, 1), wspec),
            pl.BlockSpec((Cout, K1 * Cout), wspec),
            pl.BlockSpec((Cout, 1), wspec),
            pl.BlockSpec((Cout, K1 * Cin), wspec),
            pl.BlockSpec((Cout, 1), wspec),
            pl.BlockSpec((Cout, K0 * Cout), wspec),
            pl.BlockSpec((Cout, 1), wspec),
            pl.BlockSpec((K1, HW), wspec),
        ],
        out_specs=pl.BlockSpec((1, Cout, HW), lambda n: (n, 0, 0)),
        scratch_shapes=[
            pltpu.VMEM((Cmax, HW + 2 * pad0 * W), jnp.float32),  # (K0,1) halo
            pltpu.VMEM((Cmax, HW + 2 * pad1), jnp.float32),      # (1,K1) halo
            pltpu.VMEM((Rmax, HW), jnp.float32),                 # fused-tap stack
        ],
        compiler_params=pltpu.CompilerParams(
            dimension_semantics=("parallel",),
            vmem_limit_bytes=32 * 1024 * 1024),
    )(x2d, wl1, bl1, wl2, bl2, wr1, br1, wr2, br2, wmask)

    return out2d.reshape(N, Cout, H, W)


# ----------------------------------------------------------------------------
# Pure-JAX reference (lax.conv) used for correctness checking.
# ----------------------------------------------------------------------------
def _ref_conv(x, w, b, pad):
    y = jax.lax.conv_general_dilated(
        x, w, window_strides=(1, 1),
        padding=((pad[0], pad[0]), (pad[1], pad[1])),
        dimension_numbers=("NCHW", "OIHW", "NCHW"))
    return y + b[None, :, None, None]


def _ref_forward(x, p, k):
    left = _ref_conv(x, p["wl1"], p["bl1"], (k[0] // 2, 0))
    left = _ref_conv(left, p["wl2"], p["bl2"], (0, k[1] // 2))
    right = _ref_conv(x, p["wr1"], p["br1"], (0, k[1] // 2))
    right = _ref_conv(right, p["wr2"], p["br2"], (k[0] // 2, 0))
    return left + right


if __name__ == "__main__":
    key = jax.random.PRNGKey(0)
    N, Cin, Cout, H, W = 2, 4, 4, 16, 16
    k = (7, 7)

    keys = jax.random.split(key, 9)
    x = jax.random.normal(keys[0], (N, Cin, H, W), jnp.float32)

    def init_w(kk, shape):
        fan_in = shape[1] * shape[2] * shape[3]
        bound = 1.0 / jnp.sqrt(fan_in)
        return jax.random.uniform(kk, shape, jnp.float32, -bound, bound)

    params = {
        "wl1": init_w(keys[1], (Cout, Cin, k[0], 1)),
        "bl1": jax.random.uniform(keys[2], (Cout,), jnp.float32, -0.1, 0.1),
        "wl2": init_w(keys[3], (Cout, Cout, 1, k[1])),
        "bl2": jax.random.uniform(keys[4], (Cout,), jnp.float32, -0.1, 0.1),
        "wr1": init_w(keys[5], (Cout, Cin, 1, k[1])),
        "br1": jax.random.uniform(keys[6], (Cout,), jnp.float32, -0.1, 0.1),
        "wr2": init_w(keys[7], (Cout, Cin, k[0], 1)),
        "br2": jax.random.uniform(keys[8], (Cout,), jnp.float32, -0.1, 0.1),
    }

    out = jax.jit(global_convolution_block)(x, params)
    out = jax.block_until_ready(out)

    ref = _ref_forward(x, params, k)
    assert out.shape == (N, Cout, H, W), out.shape
    assert jnp.allclose(out, ref, atol=1e-4, rtol=1e-4), (
        float(jnp.max(jnp.abs(out - ref))))

    print("KERNEL_OK")
</pallas_src>

<mosaic_0001>
module attributes {stable_mosaic.version = 11 : i64} {
  func.func @_gcn_kernel(%arg0: i32, %arg1: memref<1x4x256xf32, #tpu.memory_space<vmem>>, %arg2: memref<4x28xf32, #tpu.memory_space<vmem>>, %arg3: memref<4x1xf32, #tpu.memory_space<vmem>>, %arg4: memref<4x28xf32, #tpu.memory_space<vmem>>, %arg5: memref<4x1xf32, #tpu.memory_space<vmem>>, %arg6: memref<4x28xf32, #tpu.memory_space<vmem>>, %arg7: memref<4x1xf32, #tpu.memory_space<vmem>>, %arg8: memref<4x28xf32, #tpu.memory_space<vmem>>, %arg9: memref<4x1xf32, #tpu.memory_space<vmem>>, %arg10: memref<7x256xf32, #tpu.memory_space<vmem>>, %arg11: memref<1x4x256xf32, #tpu.memory_space<vmem>>, %arg12: memref<4x352xf32, #tpu.memory_space<vmem>>, %arg13: memref<4x262xf32, #tpu.memory_space<vmem>>, %arg14: memref<28x256xf32, #tpu.memory_space<vmem>>) attributes {dimension_semantics = [#tpu.dimension_semantics<parallel>], iteration_bounds = array<i64: 2>, scalar_prefetch = 0 : i64, scratch_operands = 3 : i64, tpu.core_type = #tpu.core_type<tc>, window_params = [{transform_indices = @transform_0, window_bounds = array<i64: 1, 4, 256>}, {pipeline_mode = #tpu.pipeline_mode<synchronous>, transform_indices = @transform_1, window_bounds = array<i64: 4, 28>}, {pipeline_mode = #tpu.pipeline_mode<synchronous>, transform_indices = @transform_2, window_bounds = array<i64: 4, 1>}, {pipeline_mode = #tpu.pipeline_mode<synchronous>, transform_indices = @transform_3, window_bounds = array<i64: 4, 28>}, {pipeline_mode = #tpu.pipeline_mode<synchronous>, transform_indices = @transform_4, window_bounds = array<i64: 4, 1>}, {pipeline_mode = #tpu.pipeline_mode<synchronous>, transform_indices = @transform_5, window_bounds = array<i64: 4, 28>}, {pipeline_mode = #tpu.pipeline_mode<synchronous>, transform_indices = @transform_6, window_bounds = array<i64: 4, 1>}, {pipeline_mode = #tpu.pipeline_mode<synchronous>, transform_indices = @transform_7, window_bounds = array<i64: 4, 28>}, {pipeline_mode = #tpu.pipeline_mode<synchronous>, transform_indices = @transform_8, window_bounds = array<i64: 4, 1>}, {pipeline_mode = #tpu.pipeline_mode<synchronous>, transform_indices = @transform_9, window_bounds = array<i64: 7, 256>}, {transform_indices = @transform_10, window_bounds = array<i64: 1, 4, 256>}]} {
    %cst = arith.constant 0.000000e+00 : f32
    %0 = vector.broadcast %cst : f32 to vector<4x352xf32>
    %c0 = arith.constant 0 : index
    %c0_0 = arith.constant 0 : index
    %1 = vector.load %arg12[%c0, %c0_0] : memref<4x352xf32, #tpu.memory_space<vmem>>, vector<4x352xf32>
    tpu.vector_store %arg12[%c0, %c0_0], %0 {strides = array<i32>} : memref<4x352xf32, #tpu.memory_space<vmem>>, vector<4x352xf32>,
    %cst_1 = arith.constant 0.000000e+00 : f32
    %2 = vector.broadcast %cst_1 : f32 to vector<4x262xf32>
    %c0_2 = arith.constant 0 : index
    %c0_3 = arith.constant 0 : index
    %3 = vector.load %arg13[%c0_2, %c0_3] : memref<4x262xf32, #tpu.memory_space<vmem>>, vector<4x262xf32>
    tpu.vector_store %arg13[%c0_2, %c0_3], %2 {strides = array<i32>} : memref<4x262xf32, #tpu.memory_space<vmem>>, vector<4x262xf32>,
    %c0_4 = arith.constant 0 : index
    %c0_5 = arith.constant 0 : index
    %c0_6 = arith.constant 0 : index
    %4 = vector.load %arg1[%c0_4, %c0_5, %c0_6] : memref<1x4x256xf32, #tpu.memory_space<vmem>>, vector<1x4x256xf32>
    %5 = vector.shape_cast %4 : vector<1x4x256xf32> to vector<4x256xf32>
    %c0_7 = arith.constant 0 : index
    %c48 = arith.constant 48 : index
    %6 = vector.load %arg12[%c0_7, %c48] : memref<4x352xf32, #tpu.memory_space<vmem>>, vector<4x256xf32>
    tpu.vector_store %arg12[%c0_7, %c48], %5 {strides = array<i32>} : memref<4x352xf32, #tpu.memory_space<vmem>>, vector<4x256xf32>,
    %c0_8 = arith.constant 0 : index
    %c0_9 = arith.constant 0 : index
    %7 = vector.load %arg12[%c0_8, %c0_9] : memref<4x352xf32, #tpu.memory_space<vmem>>, vector<4x256xf32>
    %c0_10 = arith.constant 0 : index
    %c0_11 = arith.constant 0 : index
    %8 = vector.load %arg14[%c0_10, %c0_11] : memref<28x256xf32, #tpu.memory_space<vmem>>, vector<4x256xf32>
    tpu.vector_store %arg14[%c0_10, %c0_11], %7 {strides = array<i32>} : memref<28x256xf32, #tpu.memory_space<vmem>>, vector<4x256xf32>,
    %c0_12 = arith.constant 0 : index
    %c16 = arith.constant 16 : index
    %9 = vector.load %arg12[%c0_12, %c16] : memref<4x352xf32, #tpu.memory_space<vmem>>, vector<4x256xf32>
    %c4 = arith.constant 4 : index
    %c0_13 = arith.constant 0 : index
    %10 = vector.load %arg14[%c4, %c0_13] : memref<28x256xf32, #tpu.memory_space<vmem>>, vector<4x256xf32>
    tpu.vector_store %arg14[%c4, %c0_13], %9 {strides = array<i32>} : memref<28x256xf32, #tpu.memory_space<vmem>>, vector<4x256xf32>,
    %c0_14 = arith.constant 0 : index
    %c32 = arith.constant 32 : index
    %11 = vector.load %arg12[%c0_14, %c32] : memref<4x352xf32, #tpu.memory_space<vmem>>, vector<4x256xf32>
    %c8 = arith.constant 8 : index
    %c0_15 = arith.constant 0 : index
    %12 = vector.load %arg14[%c8, %c0_15] : memref<28x256xf32, #tpu.memory_space<vmem>>, vector<4x256xf32>
    tpu.vector_store %arg14[%c8, %c0_15], %11 {strides = array<i32>} : memref<28x256xf32, #tpu.memory_space<vmem>>, vector<4x256xf32>,
    %c0_16 = arith.constant 0 : index
    %c48_17 = arith.constant 48 : index
    %13 = vector.load %arg12[%c0_16, %c48_17] : memref<4x352xf32, #tpu.memory_space<vmem>>, vector<4x256xf32>
    %c12 = arith.constant 12 : index
    %c0_18 = arith.constant 0 : index
    %14 = vector.load %arg14[%c12, %c0_18] : memref<28x256xf32, #tpu.memory_space<vmem>>, vector<4x256xf32>
    tpu.vector_store %arg14[%c12, %c0_18], %13 {strides = array<i32>} : memref<28x256xf32, #tpu.memory_space<vmem>>, vector<4x256xf32>,
    %c0_19 = arith.constant 0 : index
    %c64 = arith.constant 64 : index
    %15 = vector.load %arg12[%c0_19, %c64] : memref<4x352xf32, #tpu.memory_space<vmem>>, vector<4x256xf32>
    %c16_20 = arith.constant 16 : index
    %c0_21 = arith.constant 0 : index
    %16 = vector.load %arg14[%c16_20, %c0_21] : memref<28x256xf32, #tpu.memory_space<vmem>>, vector<4x256xf32>
    tpu.vector_store %arg14[%c16_20, %c0_21], %15 {strides = array<i32>} : memref<28x256xf32, #tpu.memory_space<vmem>>, vector<4x256xf32>,
    %c0_22 = arith.constant 0 : index
    %c80 = arith.constant 80 : index
    %17 = vector.load %arg12[%c0_22, %c80] : memref<4x352xf32, #tpu.memory_space<vmem>>, vector<4x256xf32>
    %c20 = arith.constant 20 : index
    %c0_23 = arith.constant 0 : index
    %18 = vector.load %arg14[%c20, %c0_23] : memref<28x256xf32, #tpu.memory_space<vmem>>, vector<4x256xf32>
    tpu.vector_store %arg14[%c20, %c0_23], %17 {strides = array<i32>} : memref<28x256xf32, #tpu.memory_space<vmem>>, vector<4x256xf32>,
    %c0_24 = arith.constant 0 : index
    %c96 = arith.constant 96 : index
    %19 = vector.load %arg12[%c0_24, %c96] : memref<4x352xf32, #tpu.memory_space<vmem>>, vector<4x256xf32>
    %c24 = arith.constant 24 : index
    %c0_25 = arith.constant 0 : index
    %20 = vector.load %arg14[%c24, %c0_25] : memref<28x256xf32, #tpu.memory_space<vmem>>, vector<4x256xf32>
    tpu.vector_store %arg14[%c24, %c0_25], %19 {strides = array<i32>} : memref<28x256xf32, #tpu.memory_space<vmem>>, vector<4x256xf32>,
    %c0_26 = arith.constant 0 : index
    %c0_27 = arith.constant 0 : index
    %21 = vector.load %arg2[%c0_26, %c0_27] : memref<4x28xf32, #tpu.memory_space<vmem>>, vector<4x28xf32>
    %c0_28 = arith.constant 0 : index
    %c0_29 = arith.constant 0 : index
    %22 = vector.load %arg14[%c0_28, %c0_29] : memref<28x256xf32, #tpu.memory_space<vmem>>, vector<28x256xf32>
    %cst_30 = arith.constant dense<0.000000e+00> : vector<4x256xf32>
    %23 = tpu.matmul %21, %22, %cst_30 {dimension_numbers = #tpu.dot_dimension_numbers<[1], [0], [0], [1], [0, 0, 1, 1], [], []>} : vector<4x28xf32>, vector<28x256xf32>, vector<4x256xf32> -> vector<4x256xf32>
    %c0_31 = arith.constant 0 : index
    %c0_32 = arith.constant 0 : index
    %24 = vector.load %arg3[%c0_31, %c0_32] : memref<4x1xf32, #tpu.memory_space<vmem>>, vector<4x1xf32>
    %25 = vector.broadcast %24 : vector<4x1xf32> to vector<4x256xf32>
    %26 = arith.addf %23, %25 : vector<4x256xf32>
    %c0_33 = arith.constant 0 : index
    %c3 = arith.constant 3 : index
    %27 = vector.load %arg13[%c0_33, %c3] : memref<4x262xf32, #tpu.memory_space<vmem>>, vector<4x256xf32>
    tpu.vector_store %arg13[%c0_33, %c3], %26 {strides = array<i32>} : memref<4x262xf32, #tpu.memory_space<vmem>>, vector<4x256xf32>,
    %c0_34 = arith.constant 0 : index
    %c0_35 = arith.constant 0 : index
    %28 = vector.load %arg13[%c0_34, %c0_35] : memref<4x262xf32, #tpu.memory_space<vmem>>, vector<4x256xf32>
    %c0_36 = arith.constant 0 : index
    %c0_37 = arith.constant 0 : index
    %29 = vector.load %arg10[%c0_36, %c0_37] : memref<7x256xf32, #tpu.memory_space<vmem>>, vector<1x256xf32>
    %30 = vector.broadcast %29 : vector<1x256xf32> to vector<4x256xf32>
    %31 = arith.mulf %28, %30 : vector<4x256xf32>
    %c0_38 = arith.constant 0 : index
    %c0_39 = arith.constant 0 : index
    %32 = vector.load %arg14[%c0_38, %c0_39] : memref<28x256xf32, #tpu.memory_space<vmem>>, vector<4x256xf32>
    tpu.vector_store %arg14[%c0_38, %c0_39], %31 {strides = array<i32>} : memref<28x256xf32, #tpu.memory_space<vmem>>, vector<4x256xf32>,
    %c0_40 = arith.constant 0 : index
    %c1 = arith.constant 1 : index
    %33 = vector.load %arg13[%c0_40, %c1] : memref<4x262xf32, #tpu.memory_space<vmem>>, vector<4x256xf32>
    %c1_41 = arith.constant 1 : index
    %c0_42 = arith.constant 0 : index
    %34 = vector.load %arg10[%c1_41, %c0_42] : memref<7x256xf32, #tpu.memory_space<vmem>>, vector<1x256xf32>
    %35 = vector.broadcast %34 : vector<1x256xf32> to vector<4x256xf32>
    %36 = arith.mulf %33, %35 : vector<4x256xf32>
    %c4_43 = arith.constant 4 : index
    %c0_44 = arith.constant 0 : index
    %37 = vector.load %arg14[%c4_43, %c0_44] : memref<28x256xf32, #tpu.memory_space<vmem>>, vector<4x256xf32>
    tpu.vector_store %arg14[%c4_43, %c0_44], %36 {strides = array<i32>} : memref<28x256xf32, #tpu.memory_space<vmem>>, vector<4x256xf32>,
    %c0_45 = arith.constant 0 : index
    %c2 = arith.constant 2 : index
    %38 = vector.load %arg13[%c0_45, %c2] : memref<4x262xf32, #tpu.memory_space<vmem>>, vector<4x256xf32>
    %c2_46 = arith.constant 2 : index
    %c0_47 = arith.constant 0 : index
    %39 = vector.load %arg10[%c2_46, %c0_47] : memref<7x256xf32, #tpu.memory_space<vmem>>, vector<1x256xf32>
    %40 = vector.broadcast %39 : vector<1x256xf32> to vector<4x256xf32>
    %41 = arith.mulf %38, %40 : vector<4x256xf32>
    %c8_48 = arith.constant 8 : index
    %c0_49 = arith.constant 0 : index
    %42 = vector.load %arg14[%c8_48, %c0_49] : memref<28x256xf32, #tpu.memory_space<vmem>>, vector<4x256xf32>
    tpu.vector_store %arg14[%c8_48, %c0_49], %41 {strides = array<i32>} : memref<28x256xf32, #tpu.memory_space<vmem>>, vector<4x256xf32>,
    %c0_50 = arith.constant 0 : index
    %c3_51 = arith.constant 3 : index
    %43 = vector.load %arg13[%c0_50, %c3_51] : memref<4x262xf32, #tpu.memory_space<vmem>>, vector<4x256xf32>
    %c3_52 = arith.constant 3 : index
    %c0_53 = arith.constant 0 : index
    %44 = vector.load %arg10[%c3_52, %c0_53] : memref<7x256xf32, #tpu.memory_space<vmem>>, vector<1x256xf32>
    %45 = vector.broadcast %44 : vector<1x256xf32> to vector<4x256xf32>
    %46 = arith.mulf %43, %45 : vector<4x256xf32>
    %c12_54 = arith.constant 12 : index
    %c0_55 = arith.constant 0 : index
    %47 = vector.load %arg14[%c12_54, %c0_55] : memref<28x256xf32, #tpu.memory_space<vmem>>, vector<4x256xf32>
    tpu.vector_store %arg14[%c12_54, %c0_55], %46 {strides = array<i32>} : memref<28x256xf32, #tpu.memory_space<vmem>>, vector<4x256xf32>,
    %c0_56 = arith.constant 0 : index
    %c4_57 = arith.constant 4 : index
    %48 = vector.load %arg13[%c0_56, %c4_57] : memref<4x262xf32, #tpu.memory_space<vmem>>, vector<4x256xf32>
    %c4_58 = arith.constant 4 : index
    %c0_59 = arith.constant 0 : index
    %49 = vector.load %arg10[%c4_58, %c0_59] : memref<7x256xf32, #tpu.memory_space<vmem>>, vector<1x256xf32>
    %50 = vector.broadcast %49 : vector<1x256xf32> to vector<4x256xf32>
    %51 = arith.mulf %48, %50 : vector<4x256xf32>
    %c16_60 = arith.constant 16 : index
    %c0_61 = arith.constant 0 : index
    %52 = vector.load %arg14[%c16_60, %c0_61] : memref<28x256xf32, #tpu.memory_space<vmem>>, vector<4x256xf32>
    tpu.vector_store %arg14[%c16_60, %c0_61], %51 {strides = array<i32>} : memref<28x256xf32, #tpu.memory_space<vmem>>, vector<4x256xf32>,
    %c0_62 = arith.constant 0 : index
    %c5 = arith.constant 5 : index
    %53 = vector.load %arg13[%c0_62, %c5] : memref<4x262xf32, #tpu.memory_space<vmem>>, vector<4x256xf32>
    %c5_63 = arith.constant 5 : index
    %c0_64 = arith.constant 0 : index
    %54 = vector.load %arg10[%c5_63, %c0_64] : memref<7x256xf32, #tpu.memory_space<vmem>>, vector<1x256xf32>
    %55 = vector.broadcast %54 : vector<1x256xf32> to vector<4x256xf32>
    %56 = arith.mulf %53, %55 : vector<4x256xf32>
    %c20_65 = arith.constant 20 : index
    %c0_66 = arith.constant 0 : index
    %57 = vector.load %arg14[%c20_65, %c0_66] : memref<28x256xf32, #tpu.memory_space<vmem>>, vector<4x256xf32>
    tpu.vector_store %arg14[%c20_65, %c0_66], %56 {strides = array<i32>} : memref<28x256xf32, #tpu.memory_space<vmem>>, vector<4x256xf32>,
    %c0_67 = arith.constant 0 : index
    %c6 = arith.constant 6 : index
    %58 = vector.load %arg13[%c0_67, %c6] : memref<4x262xf32, #tpu.memory_space<vmem>>, vector<4x256xf32>
    %c6_68 = arith.constant 6 : index
    %c0_69 = arith.constant 0 : index
    %59 = vector.load %arg10[%c6_68, %c0_69] : memref<7x256xf32, #tpu.memory_space<vmem>>, vector<1x256xf32>
    %60 = vector.broadcast %59 : vector<1x256xf32> to vector<4x256xf32>
    %61 = arith.mulf %58, %60 : vector<4x256xf32>
    %c24_70 = arith.constant 24 : index
    %c0_71 = arith.constant 0 : index
    %62 = vector.load %arg14[%c24_70, %c0_71] : memref<28x256xf32, #tpu.memory_space<vmem>>, vector<4x256xf32>
    tpu.vector_store %arg14[%c24_70, %c0_71], %61 {strides = array<i32>} : memref<28x256xf32, #tpu.memory_space<vmem>>, vector<4x256xf32>,
    %c0_72 = arith.constant 0 : index
    %c0_73 = arith.constant 0 : index
    %63 = vector.load %arg4[%c0_72, %c0_73] : memref<4x28xf32, #tpu.memory_space<vmem>>, vector<4x28xf32>
    %c0_74 = arith.constant 0 : index
    %c0_75 = arith.constant 0 : index
    %64 = vector.load %arg14[%c0_74, %c0_75] : memref<28x256xf32, #tpu.memory_space<vmem>>, vector<28x256xf32>
    %cst_76 = arith.constant dense<0.000000e+00> : vector<4x256xf32>
    %65 = tpu.matmul %63, %64, %cst_76 {dimension_numbers = #tpu.dot_dimension_numbers<[1], [0], [0], [1], [0, 0, 1, 1], [], []>} : vector<4x28xf32>, vector<28x256xf32>, vector<4x256xf32> -> vector<4x256xf32>
    %c0_77 = arith.constant 0 : index
    %c0_78 = arith.constant 0 : index
    %66 = vector.load %arg5[%c0_77, %c0_78] : memref<4x1xf32, #tpu.memory_space<vmem>>, vector<4x1xf32>
    %67 = vector.broadcast %66 : vector<4x1xf32> to vector<4x256xf32>
    %68 = arith.addf %65, %67 : vector<4x256xf32>
    %c0_79 = arith.constant 0 : index
    %c3_80 = arith.constant 3 : index
    %69 = vector.load %arg13[%c0_79, %c3_80] : memref<4x262xf32, #tpu.memory_space<vmem>>, vector<4x256xf32>
    tpu.vector_store %arg13[%c0_79, %c3_80], %5 {strides = array<i32>} : memref<4x262xf32, #tpu.memory_space<vmem>>, vector<4x256xf32>,
    %c0_81 = arith.constant 0 : index
    %c0_82 = arith.constant 0 : index
    %70 = vector.load %arg13[%c0_81, %c0_82] : memref<4x262xf32, #tpu.memory_space<vmem>>, vector<4x256xf32>
    %c0_83 = arith.constant 0 : index
    %c0_84 = arith.constant 0 : index
    %71 = vector.load %arg10[%c0_83, %c0_84] : memref<7x256xf32, #tpu.memory_space<vmem>>, vector<1x256xf32>
    %72 = vector.broadcast %71 : vector<1x256xf32> to vector<4x256xf32>
    %73 = arith.mulf %70, %72 : vector<4x256xf32>
    %c0_85 = arith.constant 0 : index
    %c0_86 = arith.constant 0 : index
    %74 = vector.load %arg14[%c0_85, %c0_86] : memref<28x256xf32, #tpu.memory_space<vmem>>, vector<4x256xf32>
    tpu.vector_store %arg14[%c0_85, %c0_86], %73 {strides = array<i32>} : memref<28x256xf32, #tpu.memory_space<vmem>>, vector<4x256xf32>,
    %c0_87 = arith.constant 0 : index
    %c1_88 = arith.constant 1 : index
    %75 = vector.load %arg13[%c0_87, %c1_88] : memref<4x262xf32, #tpu.memory_space<vmem>>, vector<4x256xf32>
    %c1_89 = arith.constant 1 : index
    %c0_90 = arith.constant 0 : index
    %76 = vector.load %arg10[%c1_89, %c0_90] : memref<7x256xf32, #tpu.memory_space<vmem>>, vector<1x256xf32>
    %77 = vector.broadcast %76 : vector<1x256xf32> to vector<4x256xf32>
    %78 = arith.mulf %75, %77 : vector<4x256xf32>
    %c4_91 = arith.constant 4 : index
    %c0_92 = arith.constant 0 : index
    %79 = vector.load %arg14[%c4_91, %c0_92] : memref<28x256xf32, #tpu.memory_space<vmem>>, vector<4x256xf32>
    tpu.vector_store %arg14[%c4_91, %c0_92], %78 {strides = array<i32>} : memref<28x256xf32, #tpu.memory_space<vmem>>, vector<4x256xf32>,
    %c0_93 = arith.constant 0 : index
    %c2_94 = arith.constant 2 : index
    %80 = vector.load %arg13[%c0_93, %c2_94] : memref<4x262xf32, #tpu.memory_space<vmem>>, vector<4x256xf32>
    %c2_95 = arith.constant 2 : index
    %c0_96 = arith.constant 0 : index
    %81 = vector.load %arg10[%c2_95, %c0_96] : memref<7x256xf32, #tpu.memory_space<vmem>>, vector<1x256xf32>
    %82 = vector.broadcast %81 : vector<1x256xf32> to vector<4x256xf32>
    %83 = arith.mulf %80, %82 : vector<4x256xf32>
    %c8_97 = arith.constant 8 : index
    %c0_98 = arith.constant 0 : index
    %84 = vector.load %arg14[%c8_97, %c0_98] : memref<28x256xf32, #tpu.memory_space<vmem>>, vector<4x256xf32>
    tpu.vector_store %arg14[%c8_97, %c0_98], %83 {strides = array<i32>} : memref<28x256xf32, #tpu.memory_space<vmem>>, vector<4x256xf32>,
    %c0_99 = arith.constant 0 : index
    %c3_100 = arith.constant 3 : index
    %85 = vector.load %arg13[%c0_99, %c3_100] : memref<4x262xf32, #tpu.memory_space<vmem>>, vector<4x256xf32>
    %c3_101 = arith.constant 3 : index
    %c0_102 = arith.constant 0 : index
    %86 = vector.load %arg10[%c3_101, %c0_102] : memref<7x256xf32, #tpu.memory_space<vmem>>, vector<1x256xf32>
    %87 = vector.broadcast %86 : vector<1x256xf32> to vector<4x256xf32>
    %88 = arith.mulf %85, %87 : vector<4x256xf32>
    %c12_103 = arith.constant 12 : index
    %c0_104 = arith.constant 0 : index
    %89 = vector.load %arg14[%c12_103, %c0_104] : memref<28x256xf32, #tpu.memory_space<vmem>>, vector<4x256xf32>
    tpu.vector_store %arg14[%c12_103, %c0_104], %88 {strides = array<i32>} : memref<28x256xf32, #tpu.memory_space<vmem>>, vector<4x256xf32>,
    %c0_105 = arith.constant 0 : index
    %c4_106 = arith.constant 4 : index
    %90 = vector.load %arg13[%c0_105, %c4_106] : memref<4x262xf32, #tpu.memory_space<vmem>>, vector<4x256xf32>
    %c4_107 = arith.constant 4 : index
    %c0_108 = arith.constant 0 : index
    %91 = vector.load %arg10[%c4_107, %c0_108] : memref<7x256xf32, #tpu.memory_space<vmem>>, vector<1x256xf32>
    %92 = vector.broadcast %91 : vector<1x256xf32> to vector<4x256xf32>
    %93 = arith.mulf %90, %92 : vector<4x256xf32>
    %c16_109 = arith.constant 16 : index
    %c0_110 = arith.constant 0 : index
    %94 = vector.load %arg14[%c16_109, %c0_110] : memref<28x256xf32, #tpu.memory_space<vmem>>, vector<4x256xf32>
    tpu.vector_store %arg14[%c16_109, %c0_110], %93 {strides = array<i32>} : memref<28x256xf32, #tpu.memory_space<vmem>>, vector<4x256xf32>,
    %c0_111 = arith.constant 0 : index
    %c5_112 = arith.constant 5 : index
    %95 = vector.load %arg13[%c0_111, %c5_112] : memref<4x262xf32, #tpu.memory_space<vmem>>, vector<4x256xf32>
    %c5_113 = arith.constant 5 : index
    %c0_114 = arith.constant 0 : index
    %96 = vector.load %arg10[%c5_113, %c0_114] : memref<7x256xf32, #tpu.memory_space<vmem>>, vector<1x256xf32>
    %97 = vector.broadcast %96 : vector<1x256xf32> to vector<4x256xf32>
    %98 = arith.mulf %95, %97 : vector<4x256xf32>
    %c20_115 = arith.constant 20 : index
    %c0_116 = arith.constant 0 : index
    %99 = vector.load %arg14[%c20_115, %c0_116] : memref<28x256xf32, #tpu.memory_space<vmem>>, vector<4x256xf32>
    tpu.vector_store %arg14[%c20_115, %c0_116], %98 {strides = array<i32>} : memref<28x256xf32, #tpu.memory_space<vmem>>, vector<4x256xf32>,
    %c0_117 = arith.constant 0 : index
    %c6_118 = arith.constant 6 : index
    %100 = vector.load %arg13[%c0_117, %c6_118] : memref<4x262xf32, #tpu.memory_space<vmem>>, vector<4x256xf32>
    %c6_119 = arith.constant 6 : index
    %c0_120 = arith.constant 0 : index
    %101 = vector.load %arg10[%c6_119, %c0_120] : memref<7x256xf32, #tpu.memory_space<vmem>>, vector<1x256xf32>
    %102 = vector.broadcast %101 : vector<1x256xf32> to vector<4x256xf32>
    %103 = arith.mulf %100, %102 : vector<4x256xf32>
    %c24_121 = arith.constant 24 : index
    %c0_122 = arith.constant 0 : index
    %104 = vector.load %arg14[%c24_121, %c0_122] : memref<28x256xf32, #tpu.memory_space<vmem>>, vector<4x256xf32>
    tpu.vector_store %arg14[%c24_121, %c0_122], %103 {strides = array<i32>} : memref<28x256xf32, #tpu.memory_space<vmem>>, vector<4x256xf32>,
    %c0_123 = arith.constant 0 : index
    %c0_124 = arith.constant 0 : index
    %105 = vector.load %arg6[%c0_123, %c0_124] : memref<4x28xf32, #tpu.memory_space<vmem>>, vector<4x28xf32>
    %c0_125 = arith.constant 0 : index
    %c0_126 = arith.constant 0 : index
    %106 = vector.load %arg14[%c0_125, %c0_126] : memref<28x256xf32, #tpu.memory_space<vmem>>, vector<28x256xf32>
    %cst_127 = arith.constant dense<0.000000e+00> : vector<4x256xf32>
    %107 = tpu.matmul %105, %106, %cst_127 {dimension_numbers = #tpu.dot_dimension_numbers<[1], [0], [0], [1], [0, 0, 1, 1], [], []>} : vector<4x28xf32>, vector<28x256xf32>, vector<4x256xf32> -> vector<4x256xf32>
    %c0_128 = arith.constant 0 : index
    %c0_129 = arith.constant 0 : index
    %108 = vector.load %arg7[%c0_128, %c0_129] : memref<4x1xf32, #tpu.memory_space<vmem>>, vector<4x1xf32>
    %109 = vector.broadcast %108 : vector<4x1xf32> to vector<4x256xf32>
    %110 = arith.addf %107, %109 : vector<4x256xf32>
    %c0_130 = arith.constant 0 : index
    %c48_131 = arith.constant 48 : index
    %111 = vector.load %arg12[%c0_130, %c48_131] : memref<4x352xf32, #tpu.memory_space<vmem>>, vector<4x256xf32>
    tpu.vector_store %arg12[%c0_130, %c48_131], %110 {strides = array<i32>} : memref<4x352xf32, #tpu.memory_space<vmem>>, vector<4x256xf32>,
    %c0_132 = arith.constant 0 : index
    %c0_133 = arith.constant 0 : index
    %112 = vector.load %arg12[%c0_132, %c0_133] : memref<4x352xf32, #tpu.memory_space<vmem>>, vector<4x256xf32>
    %c0_134 = arith.constant 0 : index
    %c0_135 = arith.constant 0 : index
    %113 = vector.load %arg14[%c0_134, %c0_135] : memref<28x256xf32, #tpu.memory_space<vmem>>, vector<4x256xf32>
    tpu.vector_store %arg14[%c0_134, %c0_135], %112 {strides = array<i32>} : memref<28x256xf32, #tpu.memory_space<vmem>>, vector<4x256xf32>,
    %c0_136 = arith.constant 0 : index
    %c16_137 = arith.constant 16 : index
    %114 = vector.load %arg12[%c0_136, %c16_137] : memref<4x352xf32, #tpu.memory_space<vmem>>, vector<4x256xf32>
    %c4_138 = arith.constant 4 : index
    %c0_139 = arith.constant 0 : index
    %115 = vector.load %arg14[%c4_138, %c0_139] : memref<28x256xf32, #tpu.memory_space<vmem>>, vector<4x256xf32>
    tpu.vector_store %arg14[%c4_138, %c0_139], %114 {strides = array<i32>} : memref<28x256xf32, #tpu.memory_space<vmem>>, vector<4x256xf32>,
    %c0_140 = arith.constant 0 : index
    %c32_141 = arith.constant 32 : index
    %116 = vector.load %arg12[%c0_140, %c32_141] : memref<4x352xf32, #tpu.memory_space<vmem>>, vector<4x256xf32>
    %c8_142 = arith.constant 8 : index
    %c0_143 = arith.constant 0 : index
    %117 = vector.load %arg14[%c8_142, %c0_143] : memref<28x256xf32, #tpu.memory_space<vmem>>, vector<4x256xf32>
    tpu.vector_store %arg14[%c8_142, %c0_143], %116 {strides = array<i32>} : memref<28x256xf32, #tpu.memory_space<vmem>>, vector<4x256xf32>,
    %c0_144 = arith.constant 0 : index
    %c48_145 = arith.constant 48 : index
    %118 = vector.load %arg12[%c0_144, %c48_145] : memref<4x352xf32, #tpu.memory_space<vmem>>, vector<4x256xf32>
    %c12_146 = arith.constant 12 : index
    %c0_147 = arith.constant 0 : index
    %119 = vector.load %arg14[%c12_146, %c0_147] : memref<28x256xf32, #tpu.memory_space<vmem>>, vector<4x256xf32>
    tpu.vector_store %arg14[%c12_146, %c0_147], %118 {strides = array<i32>} : memref<28x256xf32, #tpu.memory_space<vmem>>, vector<4x256xf32>,
    %c0_148 = arith.constant 0 : index
    %c64_149 = arith.constant 64 : index
    %120 = vector.load %arg12[%c0_148, %c64_149] : memref<4x352xf32, #tpu.memory_space<vmem>>, vector<4x256xf32>
    %c16_150 = arith.constant 16 : index
    %c0_151 = arith.constant 0 : index
    %121 = vector.load %arg14[%c16_150, %c0_151] : memref<28x256xf32, #tpu.memory_space<vmem>>, vector<4x256xf32>
    tpu.vector_store %arg14[%c16_150, %c0_151], %120 {strides = array<i32>} : memref<28x256xf32, #tpu.memory_space<vmem>>, vector<4x256xf32>,
    %c0_152 = arith.constant 0 : index
    %c80_153 = arith.constant 80 : index
    %122 = vector.load %arg12[%c0_152, %c80_153] : memref<4x352xf32, #tpu.memory_space<vmem>>, vector<4x256xf32>
    %c20_154 = arith.constant 20 : index
    %c0_155 = arith.constant 0 : index
    %123 = vector.load %arg14[%c20_154, %c0_155] : memref<28x256xf32, #tpu.memory_space<vmem>>, vector<4x256xf32>
    tpu.vector_store %arg14[%c20_154, %c0_155], %122 {strides = array<i32>} : memref<28x256xf32, #tpu.memory_space<vmem>>, vector<4x256xf32>,
    %c0_156 = arith.constant 0 : index
    %c96_157 = arith.constant 96 : index
    %124 = vector.load %arg12[%c0_156, %c96_157] : memref<4x352xf32, #tpu.memory_space<vmem>>, vector<4x256xf32>
    %c24_158 = arith.constant 24 : index
    %c0_159 = arith.constant 0 : index
    %125 = vector.load %arg14[%c24_158, %c0_159] : memref<28x256xf32, #tpu.memory_space<vmem>>, vector<4x256xf32>
    tpu.vector_store %arg14[%c24_158, %c0_159], %124 {strides = array<i32>} : memref<28x256xf32, #tpu.memory_space<vmem>>, vector<4x256xf32>,
    %c0_160 = arith.constant 0 : index
    %c0_161 = arith.constant 0 : index
    %126 = vector.load %arg8[%c0_160, %c0_161] : memref<4x28xf32, #tpu.memory_space<vmem>>, vector<4x28xf32>
    %c0_162 = arith.constant 0 : index
    %c0_163 = arith.constant 0 : index
    %127 = vector.load %arg14[%c0_162, %c0_163] : memref<28x256xf32, #tpu.memory_space<vmem>>, vector<28x256xf32>
    %cst_164 = arith.constant dense<0.000000e+00> : vector<4x256xf32>
    %128 = tpu.matmul %126, %127, %cst_164 {dimension_numbers = #tpu.dot_dimension_numbers<[1], [0], [0], [1], [0, 0, 1, 1], [], []>} : vector<4x28xf32>, vector<28x256xf32>, vector<4x256xf32> -> vector<4x256xf32>
    %c0_165 = arith.constant 0 : index
    %c0_166 = arith.constant 0 : index
    %129 = vector.load %arg9[%c0_165, %c0_166] : memref<4x1xf32, #tpu.memory_space<vmem>>, vector<4x1xf32>
    %130 = vector.broadcast %129 : vector<4x1xf32> to vector<4x256xf32>
    %131 = arith.addf %128, %130 : vector<4x256xf32>
    %132 = arith.addf %68, %131 : vector<4x256xf32>
    %c0_167 = arith.constant 0 : index
    %c0_168 = arith.constant 0 : index
    %c0_169 = arith.constant 0 : index
    %133 = vector.load %arg11[%c0_167, %c0_168, %c0_169] : memref<1x4x256xf32, #tpu.memory_space<vmem>>, vector<1x4x256xf32>
    %134 = vector.shape_cast %133 : vector<1x4x256xf32> to vector<4x256xf32>
    %135 = vector.shape_cast %132 : vector<4x256xf32> to vector<1x4x256xf32>
    tpu.vector_store %arg11[%c0_167, %c0_168, %c0_169], %135 {strides = array<i32>} : memref<1x4x256xf32, #tpu.memory_space<vmem>>, vector<1x4x256xf32>,
    return
  }
  func.func @transform_0(%arg0: i32) -> (i32, i32, i32) {
    %c0_i32 = arith.constant 0 : i32
    %c0_i32_0 = arith.constant 0 : i32
    %c0_i32_1 = arith.constant 0 : i32
    return %arg0, %c0_i32, %c0_i32_0 : i32, i32, i32
  }
  func.func @transform_1(%arg0: i32) -> (i32, i32) {
    %c0_i32 = arith.constant 0 : i32
    %c0_i32_0 = arith.constant 0 : i32
    %c0_i32_1 = arith.constant 0 : i32
    return %c0_i32, %c0_i32_0 : i32, i32
  }
  func.func @transform_2(%arg0: i32) -> (i32, i32) {
    %c0_i32 = arith.constant 0 : i32
    %c0_i32_0 = arith.constant 0 : i32
    %c0_i32_1 = arith.constant 0 : i32
    return %c0_i32, %c0_i32_0 : i32, i32
  }
  func.func @transform_3(%arg0: i32) -> (i32, i32) {
    %c0_i32 = arith.constant 0 : i32
    %c0_i32_0 = arith.constant 0 : i32
    %c0_i32_1 = arith.constant 0 : i32
    return %c0_i32, %c0_i32_0 : i32, i32
  }
  func.func @transform_4(%arg0: i32) -> (i32, i32) {
    %c0_i32 = arith.constant 0 : i32
    %c0_i32_0 = arith.constant 0 : i32
    %c0_i32_1 = arith.constant 0 : i32
    return %c0_i32, %c0_i32_0 : i32, i32
  }
  func.func @transform_5(%arg0: i32) -> (i32, i32) {
    %c0_i32 = arith.constant 0 : i32
    %c0_i32_0 = arith.constant 0 : i32
    %c0_i32_1 = arith.constant 0 : i32
    return %c0_i32, %c0_i32_0 : i32, i32
  }
  func.func @transform_6(%arg0: i32) -> (i32, i32) {
    %c0_i32 = arith.constant 0 : i32
    %c0_i32_0 = arith.constant 0 : i32
    %c0_i32_1 = arith.constant 0 : i32
    return %c0_i32, %c0_i32_0 : i32, i32
  }
  func.func @transform_7(%arg0: i32) -> (i32, i32) {
    %c0_i32 = arith.constant 0 : i32
    %c0_i32_0 = arith.constant 0 : i32
    %c0_i32_1 = arith.constant 0 : i32
    return %c0_i32, %c0_i32_0 : i32, i32
  }
  func.func @transform_8(%arg0: i32) -> (i32, i32) {
    %c0_i32 = arith.constant 0 : i32
    %c0_i32_0 = arith.constant 0 : i32
    %c0_i32_1 = arith.constant 0 : i32
    return %c0_i32, %c0_i32_0 : i32, i32
  }
  func.func @transform_9(%arg0: i32) -> (i32, i32) {
    %c0_i32 = arith.constant 0 : i32
    %c0_i32_0 = arith.constant 0 : i32
    %c0_i32_1 = arith.constant 0 : i32
    return %c0_i32, %c0_i32_0 : i32, i32
  }
  func.func @transform_10(%arg0: i32) -> (i32, i32, i32) {
    %c0_i32 = arith.constant 0 : i32
    %c0_i32_0 = arith.constant 0 : i32
    %c0_i32_1 = arith.constant 0 : i32
    return %arg0, %c0_i32, %c0_i32_0 : i32, i32, i32
  }
}

</mosaic_0001>

<bundles_post_ra>
// kernel: global_convolution_block.1
= control target key start
LH: loop header
LB: loop body
LE: loop exit
PB: predicated region body
PF: predicated region fallthrough
CT: control target
= control target key end

     0   :  { %s1674_s13 = smov 0   ;;  %s2017_s0 = inlined_call_operand.vmem [shape: f32[2,4,256], index: 0, kind: input, shape index: {}]   ;;  %s2018_s1 = inlined_call_operand.vmem [shape: f32[4,28], index: 1, kind: input, shape index: {}]   ;;  %s2019_s2 = inlined_call_operand.vmem [shape: f32[4,1], index: 2, kind: input, shape index: {}]   ;;  %s2020_s3 = inlined_call_operand.vmem [shape: f32[4,28], index: 3, kind: input, shape index: {}]   ;;  %s2021_s4 = inlined_call_operand.vmem [shape: f32[4,1], index: 4, kind: input, shape index: {}]   ;;  %s2022_s5 = inlined_call_operand.vmem [shape: f32[4,28], index: 5, kind: input, shape index: {}]   ;;  %s2023_s6 = inlined_call_operand.vmem [shape: f32[4,1], index: 6, kind: input, shape index: {}]   ;;  %s2024_s7 = inlined_call_operand.vmem [shape: f32[4,28], index: 7, kind: input, shape index: {}]   ;;  %s2025_s8 = inlined_call_operand.vmem [shape: f32[4,1], index: 8, kind: input, shape index: {}]   ;;  %s2026_s9 = inlined_call_operand.vmem [shape: f32[7,256], index: 9, kind: input, shape index: {}]   ;;  %s2027_s10 = inlined_call_operand.vmem [shape: f32[2,4,256], index: 10, kind: output, shape index: {}]  }
   0x1 LB: > { %s1520_s14 = sadd.s32 4294967295, %s1597_s13   ;;  %p1524_p0 = scmp.ge.s32.totalorder %s1597_s13, 1  ;;  %s1597_s13 = sphi %s1674_s13, %s20_s13  }
   0x2   : > { %p312_p1 = scmp.lt.s32.totalorder %s1597_s13, 3 }
   0x4   : > { %p313_p2 = pnand %p1524_p0, %p312_p1 }
   0x5   : > { %p350_p3 = scmp.lt.s32.totalorder (!%p313_p2), %s1520_s14, 1  ;;  %s1600_s19 = smov (!%p313_p2), 48  }
   0x6   : > { %316 = sbr.rel (%p313_p2) target bundleno = 1403 (0x57b), region = 60  ;;  %s1601_s20 = smov (!%p313_p2), 112  }
   0x7   : > { %s1602_s21 = smov (!%p313_p2), 96   ;;  %s1603_s22 = smov (!%p313_p2), 80  }
   0x8   : > { %s1604_s23 = smov (!%p313_p2), 64   ;;  %s2029_s24 = smov (!%p313_p2), 32  }
   0x9   : > { %s1608_s25 = smov (!%p313_p2), 2   ;;  %s1609_s26 = smov (!%p313_p2), 4  }
   0xa   : > { %s1610_s29 = smov (!%p313_p2), 5   ;;  %s1611_s30 = smov (!%p313_p2), 3  }
   0xb   : > { %vm361_vm0 = vcmask 781312   ;;  %v1599_v0 = vmov 0.0   ;;  %s2038_s14 = smov (!%p350_p3, %s1520_s14), 1  ;;  %vm375_vm1 = vcmask 1043840   ;;  %vm376_vm2 = vcmask 1047556   ;;  %s1612_s11 = smov 6  }
   0xc   : > { %360 = vst [vmem:[#allocation2] sm:$0xff] %v1599_v0  ;;  %s2028_s15 = sshll.u32 %s2038_s14, 3  ;;  %vm371_vm3 = vcmask 392192   ;;  %vm379_vm4 = vcmask 388096   ;;  %vm1698_vm5 = vmor %vm376_vm2, %vm375_vm1  ;;  %vm407_vm6 = vcmask 916480   ;;  %vm430_vm7 = vcmask 785408  }
   0xd   : > { %362 = vst.msk [vmem:[#allocation2 + $0x8] sm:$0xf] %vm361_vm0, %v1599_v0  ;;  %s354_s18 = scalar_lea.vmem %s2017_s0, %s2028_s15  ;;  %vm454_vm8 = vcmask 654336   ;;  %vm477_vm9 = vcmask 523264   ;;  %v539_v53 = vld [vmem:[%s2019_s2] sm:$0xf] }
   0xe   : > { %363 = vst [vmem:[#allocation3] sm:$0xff] %v1599_v0  ;;  %v1693_v1 = vld [vmem:[%s354_s18] sm:$0xff]  ;;  %vm523_vm10 = vcmask 261120   ;;  %v1606_v55 = vmov 0   ;;  %vm549_vm11 = vcmask 1043456   ;;  %s1607_s18 = smov 1  }
   0xf   : > { %368 = vrot.lane.b32.xlu0 %v1693_v1, %s1600_s19  ;;  %v1533_v54 = vld [vmem:[%s2026_s9 + $0x1] ss:$8 sm:$0x3]  ;;  %1589 = vset.pattern.permute.xlu1 %v1606_v55  ;;  %v1534_v58 = vld [vmem:[%s2026_s9 + $0x2] ss:$8 sm:$0x3] }
  0x10   : > { %v634_v56 = vperm.slane %v1533_v54, 0  ;;  %v635_v57 = vperm.slane %v1533_v54, 1  ;;  %1590 = vset.pattern.permute.xlu0 %v1606_v55  ;;  %v675_v59 = vperm.slane %v1534_v58, 1  ;;  %v1536_v60 = vld [vmem:[%s2026_s9 + $0x4] ss:$8 sm:$0x3] }
  0x11   : > { %vm545_vm12 = vcmask 228352   ;;  %vm364_vm13 = vcmask 44032   ;;  %vm607_vm14 = vcmask 1043480   ;;  %vm603_vm15 = vcmask 23552   ;;  %s1615_s15 = smov 125   ;;  %s1617_s12 = smov 123  }
  0x12   : > { %v636_v63 = vrot.slane %v635_v57, 4  ;;  %365 = vst.msk [vmem:[#allocation3 + $0x8] sm:$0xf] %vm364_vm13, %v1599_v0  ;;  %vm610_vm0 = vcmask 19456   ;;  %vm1823_vm1 = vmor %vm376_vm2, %vm607_vm14  ;;  %vm641_vm2 = vcmask 7168   ;;  %vm681_vm13 = vcmask 15360  }
  0x13   : > { %vm759_vm14 = vcmask 31744   ;;  %s2035_s28 = smov 32  }
  0x81   : > { %v369_v2 = vpop.permute.xlu0 %368 }
  0x82   : > { %v370_v4 = vrot.slane %v369_v2, 4 }
  0x84   : > { %v372_v5 = vsel %vm371_vm3, %v370_v4, %v369_v2  ;;  %380 = vst.msk [vmem:[#allocation2 + $0x8] sm:$0xf] %vm379_vm4, %v370_v4  ;;  %v674_v2 = vperm.slane %v1534_v58, 0  ;;  %v753_v4 = vperm.slane %v1536_v60, 1 }
  0x85   : > { %378 = vst.msk [vmem:[#allocation2] sm:$0xff] %vm1698_vm5, %v372_v5 }
  0x8b   : > { %v391_v6 = vld [vmem:[#allocation2 + $0x8] sm:$0xf] }
  0x8c   : > { %v381_v7 = vld [vmem:[#allocation2] sm:$0xff]  ;;  %397 = vst [vmem:[#allocation1 + $0x11] ss:$2 sm:$0xff] %v391_v6  ;;  %v415_v11 = vld [vmem:[#allocation2 + $0x8] sm:$0xf] }
  0x8d   : > { %383 = vst [vmem:[#allocation1] ss:$2 sm:$0xff] %v381_v7  ;;  %v438_v12 = vld [vmem:[#allocation2 + $0x8] sm:$0xf] }
  0x8e   : > { %v462_v16 = vld [vmem:[#allocation2 + $0x8] sm:$0xf] }
  0x8f   : > { %v485_v20 = vld [vmem:[#allocation2 + $0x8] sm:$0xf] }
  0x90   : > { %v508_v24 = vld [vmem:[#allocation2 + $0x8] sm:$0xf] }
  0x93   : > { %v400_v8 = vld.sshfl [vmem:[#allocation1 + $0x10] sm:$0xff pattern:$0x75316420] }
  0x94   : > { %v384_v9 = vld.sshfl [vmem:[#allocation1] sm:$0xff pattern:$0x75316420]  ;;  %v385_v10 = vld.sshfl [vmem:[#allocation1 + $0x8] sm:$0xff pattern:$0x75316420]  ;;  %405 = vrot.lane.b32.xlu0 %v400_v8, %s1601_s20 }
  0x95   : > { %395 = vst [vmem:[#allocation1 + $0x1] ss:$2 sm:$0xff] %v381_v7  ;;  %v1537_v8 = vld [vmem:[%s2026_s9 + $0x5] ss:$8 sm:$0x3] }
  0x96   : > { %420 = vst [vmem:[#allocation1 + $0x10] ss:$2 sm:$0xff] %v415_v11  ;;  %v752_v11 = vperm.slane %v1536_v60, 0 }
  0x97   : > { %388 = vst [vmem:[#allocation4 + $0x30] sm:$0xf] %v384_v9  ;;  %v637_v9 = vsel %vm549_vm11, %v634_v56, %v636_v63  ;;  %v1538_v63 = vld [vmem:[%s2026_s9 + $0x6] ss:$8 sm:$0x3] }
  0x98   : > { %389 = vst [vmem:[#allocation4] sm:$0xf] %v385_v10 }
  0x9c   : > { %v398_v13 = vld.sshfl [vmem:[#allocation1] sm:$0xff pattern:$0x75316420]  ;;  %v399_v14 = vld.sshfl [vmem:[#allocation1 + $0x8] sm:$0xff pattern:$0x75316420] }
  0x9d   : > { %418 = vst [vmem:[#allocation1] ss:$2 sm:$0xff] %v381_v7  ;;  %v423_v15 = vld.sshfl [vmem:[#allocation1 + $0x10] sm:$0xff pattern:$0x75316420]  ;;  %403 = vrot.lane.b32.xlu2 %v399_v14, %s1601_s20 }
  0x9e   : > { %444 = vst [vmem:[#allocation1 + $0x11] ss:$2 sm:$0xff] %v438_v12  ;;  %428 = vrot.lane.b32.xlu0 %v423_v15, %s1602_s21  ;;  %v754_v12 = vrot.slane %v753_v4, 4  ;;  %v832_v4 = vperm.slane %v1538_v63, 1 }
  0xa4   : > { %v421_v17 = vld.sshfl [vmem:[#allocation1] sm:$0xff pattern:$0x75316420]  ;;  %v422_v18 = vld.sshfl [vmem:[#allocation1 + $0x8] sm:$0xff pattern:$0x75316420] }
  0xa5   : > { %442 = vst [vmem:[#allocation1 + $0x1] ss:$2 sm:$0xff] %v381_v7  ;;  %v447_v19 = vld.sshfl [vmem:[#allocation1 + $0x10] sm:$0xff pattern:$0x75316420] }
  0xa6   : > { %467 = vst [vmem:[#allocation1 + $0x10] ss:$2 sm:$0xff] %v462_v16  ;;  %452 = vrot.lane.b32.xlu2 %v447_v19, %s1603_s22  ;;  %v755_v16 = vsel %vm549_vm11, %v752_v11, %v754_v12  ;;  %v1547_v11 = vld [vmem:[%s2026_s9 + $0x5] ss:$8 sm:$0x3] }
  0xac   : > { %v445_v21 = vld.sshfl [vmem:[#allocation1] sm:$0xff pattern:$0x75316420]  ;;  %v446_v22 = vld.sshfl [vmem:[#allocation1 + $0x8] sm:$0xff pattern:$0x75316420] }
  0xad   : > { %465 = vst [vmem:[#allocation1] ss:$2 sm:$0xff] %v381_v7  ;;  %v470_v23 = vld.sshfl [vmem:[#allocation1 + $0x10] sm:$0xff pattern:$0x75316420]  ;;  %450 = vrot.lane.b32.xlu1 %v446_v22, %s1603_s22 }
  0xae   : > { %491 = vst [vmem:[#allocation1 + $0x11] ss:$2 sm:$0xff] %v485_v20  ;;  %426 = vrot.lane.b32.xlu2 %v422_v18, %s1602_s21 }
  0xb4   : > { %v468_v25 = vld.sshfl [vmem:[#allocation1] sm:$0xff pattern:$0x75316420]  ;;  %v469_v26 = vld.sshfl [vmem:[#allocation1 + $0x8] sm:$0xff pattern:$0x75316420] }
  0xb5   : > { %489 = vst [vmem:[#allocation1 + $0x1] ss:$2 sm:$0xff] %v381_v7  ;;  %v494_v27 = vld.sshfl [vmem:[#allocation1 + $0x10] sm:$0xff pattern:$0x75316420]  ;;  %473 = vrot.lane.b32.xlu1 %v469_v26, %s1604_s23 }
  0xb6   : > { %513 = vst [vmem:[#allocation1 + $0x10] ss:$2 sm:$0xff] %v508_v24  ;;  %499 = vrot.lane.b32.xlu0 %v494_v27, %s1600_s19  ;;  %475 = vrot.lane.b32.xlu2 %v470_v23, %s1604_s23 }
  0xbc   : > { %v492_v28 = vld.sshfl [vmem:[#allocation1] sm:$0xff pattern:$0x75316420]  ;;  %v493_v29 = vld.sshfl [vmem:[#allocation1 + $0x8] sm:$0xff pattern:$0x75316420] }
  0xbd   : > { %511 = vst [vmem:[#allocation1] ss:$2 sm:$0xff] %v381_v7  ;;  %v516_v30 = vld.sshfl [vmem:[#allocation1 + $0x10] sm:$0xff pattern:$0x75316420]  ;;  %v676_v7 = vrot.slane %v675_v59, 4 }
  0xbe   : > { %471 = vrot.lane.b32.xlu0 %v468_v25, %s1604_s23  ;;  %521 = vrot.lane.b32.xlu1 %v516_v30, %s2029_s24  ;;  %v530_v25 = vld [vmem:[%s2018_s1] sm:$0xf] }
  0xbf   : > { %497 = vrot.lane.b32.xlu2 %v493_v29, %s1600_s19  ;;  %v677_v10 = vsel %vm549_vm11, %v674_v2, %v676_v7  ;;  %v1544_v7 = vld [vmem:[%s2026_s9 + $0x2] ss:$8 sm:$0x3] }
  0xc0   : > { %v995_v0 = vperm.slane %v1544_v7, 0 }
  0xc4   : > { %v515_v31 = vld.sshfl [vmem:[#allocation1 + $0x8] sm:$0xff pattern:$0x75316420]  ;;  %v514_v32 = vld.sshfl [vmem:[#allocation1] sm:$0xff pattern:$0x75316420] }
  0xc6   : > { %495 = vrot.lane.b32.xlu1 %v492_v28, %s1600_s19  ;;  %519 = vrot.lane.b32.xlu0 %v515_v31, %s2029_s24 }
  0xc7   : > { %448 = vrot.lane.b32.xlu2 %v445_v21, %s1603_s22 }
  0xce   : > { %401 = vrot.lane.b32.xlu0 %v398_v13, %s1601_s20  ;;  %517 = vrot.lane.b32.xlu1 %v514_v32, %s2029_s24  ;;  %v792_v13 = vperm.slane %v1537_v8, 1  ;;  %s1616_s24 = smov 124  }
  0xd0   : > { %v793_v18 = vrot.slane %v792_v13, 4  ;;  %v1105_v13 = vperm.slane %v1547_v11, 1 }
  0xd6   : > { %424 = vrot.lane.b32.xlu1 %v421_v17, %s1602_s21  ;;  %638 = vrot.lane.b32.xlu0 %v637_v9, %s1607_s18  ;;  %v791_v17 = vperm.slane %v1537_v8, 0  ;;  %v996_v9 = vperm.slane %v1544_v7, 1 }
  0xd8   : > { %v794_v23 = vsel %vm549_vm11, %v791_v17, %v793_v18  ;;  %v613_v18 = vld [vmem:[%s2026_s9] ss:$8 sm:$0x3] }
  0xde   : > { %542 = vperm.xlu1 %1589, %v539_v53   ;;  %756 = vrot.lane.b32.xlu0 %v755_v16, %s1609_s26  ;;  %v1535_v53 = vld [vmem:[%s2026_s9 + $0x3] ss:$8 sm:$0x3] }
  0xdf   : > { %v714_v59 = vperm.slane %v1535_v53, 1 }
  0xe6   : > { %678 = vrot.lane.b32.xlu1 %v677_v10, %s1608_s25  ;;  %929 = vrot.lane.b32.xlu0 %v1693_v1, %s1611_s30  ;;  %v1546_v1 = vld [vmem:[%s2026_s9 + $0x4] ss:$8 sm:$0x3]  ;;  %v997_v10 = vrot.slane %v996_v9, 4 }
  0xe8   : > { %v998_v12 = vsel %vm549_vm11, %v995_v0, %v997_v10 }
  0xee   : > { %795 = vrot.lane.b32.xlu1 %v794_v23, %s1610_s29 }
  0xf7   : > { %v1724_v33 = vpop.permute.xlu2 %403 }
 0x100   : > { %v453_v34 = vpop.permute.xlu2 %452 }
 0x106   : > { %v406_v35 = vpop.permute.xlu0 %405 }
 0x107   : > { %v409_v36 = vsel %vm407_vm6, %v1724_v33, %v406_v35 }
 0x108   : > { %413 = vst [vmem:[#allocation4] sm:$0xf0] %v409_v36  ;;  %v1728_v37 = vpop.permute.xlu2 %426 }
 0x10f   : > { %v532_v26 = vld [vmem:[#allocation4] sm:$0xff] }
 0x110   : > { %v429_v38 = vpop.permute.xlu0 %428  ;;  %v476_v39 = vpop.permute.xlu2 %475 }
 0x111   : > { %v432_v40 = vsel %vm430_vm7, %v1728_v37, %v429_v38 }
 0x112   : > { %436 = vst [vmem:[#allocation4 + $0x10] sm:$0xf] %v432_v40 }
 0x119   : > { %v498_v41 = vpop.permute.xlu2 %497 }
 0x11f   : > { %v451_v42 = vpop.permute.xlu1 %450 }
 0x120   : > { %v456_v43 = vsel %vm454_vm8, %v451_v42, %v453_v34  ;;  %v1543_v34 = vld [vmem:[%s2026_s9 + $0x1] ss:$8 sm:$0x3] }
 0x121   : > { %460 = vst [vmem:[#allocation4 + $0x10] sm:$0xf0] %v456_v43  ;;  %v449_v44 = vpop.permute.xlu2 %448  ;;  %v959_v38 = vperm.slane %v1543_v34, 1 }
 0x122   : > { %v455_v45 = vsel %vm454_vm8, %v449_v44, %v451_v42 }
 0x123   : > { %459 = vst [vmem:[#allocation4 + $0x18] sm:$0xf0] %v455_v45  ;;  %v960_v43 = vrot.slane %v959_v38, 4  ;;  %v1069_v45 = vperm.slane %v1546_v1, 1 }
 0x127   : > { %v474_v46 = vpop.permute.xlu1 %473 }
 0x128   : > { %v500_v47 = vpop.permute.xlu0 %499  ;;  %v479_v48 = vsel %vm477_vm9, %v474_v46, %v476_v39  ;;  %v534_v24 = vld [vmem:[#allocation4 + $0x10] sm:$0xff]  ;;  %v1548_v39 = vld [vmem:[%s2026_s9 + $0x6] ss:$8 sm:$0x3] }
 0x129   : > { %v502_v49 = vsel %vm371_vm3, %v498_v41, %v500_v47  ;;  %483 = vst [vmem:[#allocation4 + $0x20] sm:$0xf] %v479_v48  ;;  %v1142_v44 = vperm.slane %v1548_v39, 1 }
 0x12a   : > { %506 = vst [vmem:[#allocation4 + $0x20] sm:$0xf0] %v502_v49  ;;  %v1141_v49 = vperm.slane %v1548_v39, 0 }
 0x130   : > { %v472_v50 = vpop.permute.xlu0 %471  ;;  %v522_v51 = vpop.permute.xlu1 %521 }
 0x131   : > { %v478_v52 = vsel %vm477_vm9, %v472_v50, %v474_v46  ;;  %v536_v22 = vld [vmem:[#allocation4 + $0x20] sm:$0xff]  ;;  %v1143_v50 = vrot.slane %v1142_v44, 4 }
 0x132   : > { %482 = vst [vmem:[#allocation4 + $0x8] sm:$0xf] %v478_v52  ;;  %v1070_v52 = vrot.slane %v1069_v45, 4 }
 0x133   : > { %v1144_v55 = vsel %vm549_vm11, %v1141_v49, %v1143_v50 }
 0x138   : > { %v496_v61 = vpop.permute.xlu1 %495  ;;  %v520_v62 = vpop.permute.xlu0 %519 }
 0x139   : > { %v501_v5 = vsel %vm371_vm3, %v496_v61, %v498_v41  ;;  %v525_v6 = vsel %vm523_vm10, %v520_v62, %v522_v51  ;;  %v1068_v51 = vperm.slane %v1546_v1, 0  ;;  %v713_v61 = vperm.slane %v1535_v53, 0 }
 0x13a   : > { %505 = vst [vmem:[#allocation4 + $0x8] sm:$0xf0] %v501_v5  ;;  %v831_v5 = vperm.slane %v1538_v63, 0 }
 0x13b   : > { %529 = vst [vmem:[#allocation4 + $0x38] sm:$0xf] %v525_v6  ;;  %v1071_v56 = vsel %vm549_vm11, %v1068_v51, %v1070_v52  ;;  %v833_v6 = vrot.slane %v832_v4, 4 }
 0x13d   : > { %v834_v8 = vsel %vm549_vm11, %v831_v5, %v833_v6 }
 0x140   : > { %v402_v14 = vpop.permute.xlu0 %401  ;;  %v518_v15 = vpop.permute.xlu1 %517 }
 0x141   : > { %v408_v19 = vsel %vm407_vm6, %v402_v14, %v1724_v33  ;;  %v524_v20 = vsel %vm523_vm10, %v518_v15, %v520_v62  ;;  %v535_v30 = vld [vmem:[#allocation4 + $0x8] sm:$0xff]  ;;  %v715_v62 = vrot.slane %v714_v59, 4  ;;  %v1104_v14 = vperm.slane %v1547_v11, 0 }
 0x142   : > { %412 = vst [vmem:[#allocation4 + $0x30] sm:$0xf0] %v408_v19  ;;  %v538_v21 = vld [vmem:[#allocation4 + $0x38] sm:$0xf]  ;;  %v1106_v15 = vrot.slane %v1105_v13, 4 }
 0x143   : > { %528 = vst [vmem:[#allocation4 + $0x28] sm:$0xf] %v524_v20  ;;  %1531 = vmatpush.msk.msra.mxu1 %vm549_vm11, %v538_v21  ;;  %v1545_v33 = vld [vmem:[%s2026_s9 + $0x3] ss:$8 sm:$0x3]  ;;  %v716_v2 = vsel %vm549_vm11, %v713_v61, %v715_v62 }
 0x144   : > { %v1031_v35 = vperm.slane %v1545_v33, 0  ;;  %v1032_v36 = vperm.slane %v1545_v33, 1  ;;  %v1107_v16 = vsel %vm549_vm11, %v1104_v14, %v1106_v15  ;;  %v938_v13 = vld [vmem:[%s2026_s9] ss:$8 sm:$0x3] }
 0x145   : > { %589 = vmatpush.msra.mxu1 %v536_v22  ;;  %v616_v22 = vperm.slane %v613_v18, 1  ;;  %v941_v21 = vperm.slane %v938_v13, 1 }
 0x146   : > { %v1033_v42 = vrot.slane %v1032_v36, 4 }
 0x147   : > { %590 = vmatpush.msra.mxu1 %v534_v24 }
 0x148   : > { %v425_v27 = vpop.permute.xlu1 %424  ;;  %v1034_v46 = vsel %vm549_vm11, %v1031_v35, %v1033_v42  ;;  %v639_v17 = vpop.permute.xlu0 %638 }
 0x149   : > { %591 = vmatpush.msra.mxu1 %v532_v26  ;;  %v431_v28 = vsel %vm430_vm7, %v425_v27, %v1728_v37  ;;  %v531_v32 = vld [vmem:[#allocation4 + $0x30] sm:$0xff]  ;;  %v958_v37 = vperm.slane %v1543_v34, 0  ;;  %1035 = vrot.lane.b32.xlu0 %v1034_v46, %s1611_s30  ;;  %v617_v26 = vrot.slane %v616_v22, 4  ;;  %v640_v27 = vrot.slane %v639_v17, 4 }
 0x14a   : > { %435 = vst [vmem:[#allocation4 + $0x18] sm:$0xf] %v431_v28  ;;  %v537_v29 = vld [vmem:[#allocation4 + $0x28] sm:$0xf]  ;;  %1532 = vmatmul.msk.f32.vlgmr.msra.gmra.mxu1 %vm545_vm12, %v530_v25 }
 0x14b   : > { %1529 = vmatpush.msk.msra.mxu0 %vm549_vm11, %v537_v29  ;;  %v961_v47 = vsel %vm549_vm11, %v958_v37, %v960_v43  ;;  %v642_v42 = vsel %vm641_vm2, %v640_v27, %v639_v17 }
 0x14c   : > { %962 = vrot.lane.b32.xlu1 %v961_v47, %s1607_s18 }
 0x14d   : > { %569 = vmatpush.msra.mxu0 %v535_v30 }
 0x150   : > { %v543_v41 = vpop.permute.xlu1 %542  ;;  %v1820_v19 = vpop.permute.xlu0 %756 }
 0x151   : > { %v533_v31 = vld [vmem:[#allocation4 + $0x18] sm:$0xff]  ;;  %1145 = vrot.lane.b32.xlu0 %v1144_v55, %s1612_s11 }
 0x152   : > { %570 = vmatpush.msra.mxu0 %v533_v31 }
 0x154   : > { %571 = vmatpush.msra.mxu0 %v531_v32  ;;  %1072 = vrot.lane.b32.xlu1 %v1071_v56, %s1609_s26  ;;  %v758_v56 = vrot.slane %v1820_v19, 4  ;;  %s1618_s26 = smov 122  }
 0x155   : > { %1530 = vmatmul.msk.f32.vlgmr.msra.gmra.mxu0 %vm545_vm12, %v530_v25  ;;  %v615_v25 = vperm.slane %v613_v18, 0 }
 0x156   : > { %v760_v4 = vsel %vm759_vm14, %v758_v56, %v1820_v19 }
 0x157   : > { %v618_v30 = vsel %vm549_vm11, %v615_v25, %v617_v26  ;;  %v940_v26 = vperm.slane %v938_v13, 0 }
 0x158   : > { %v930_v28 = vpop.permute.xlu0 %929  ;;  %v679_v39 = vpop.permute.xlu1 %678 }
 0x159   : > { %v931_v29 = vrot.slane %v930_v28, 4 }
 0x15b   : > { %v932_v32 = vsel %vm603_vm15, %v931_v29, %v930_v28 }
 0x160   : > { %v796_v59 = vpop.permute.xlu1 %795 }
 0x1be   : > { %v963_v15 = vpop.permute.xlu1 %962 }
 0x1bf   : > { %v964_v18 = vrot.slane %v963_v15, 4 }
 0x1c7   : > { %v593_v40 = vpop.f32.mrf.mxu1 }
 0x1c8   : > { %v594_v48 = vadd.f32 %v593_v40, %v543_v41 }
 0x1ca   : > { %v598_v54 = vrot.slane %v594_v48, 4 }
 0x1d2   : > { %v573_v57 = vpop.f32.mrf.mxu0 }
 0x1d3   : > { %v574_v58 = vadd.f32 %v573_v57, %v543_v41  ;;  %v680_v41 = vrot.slane %v679_v39, 4 }
 0x1d5   : > { %v599_v60 = vsel %vm549_vm11, %v574_v58, %v598_v54  ;;  %v682_v50 = vsel %vm681_vm13, %v680_v41, %v679_v39 }
 0x1d6   : > { %600 = vrot.lane.b32.xlu2 %v599_v60, %s1611_s30 }
 0x1de   : > { %717 = vrot.lane.b32.xlu2 %v716_v2, %s1611_s30  ;;  %v797_v2 = vrot.slane %v796_v59, 4 }
 0x1e6   : > { %835 = vrot.lane.b32.xlu2 %v834_v8, %s1612_s11 }
 0x1ee   : > { %999 = vrot.lane.b32.xlu2 %v998_v12, %s1608_s25  ;;  %s1613_s25 = smov 127  }
 0x1f6   : > { %1108 = vrot.lane.b32.xlu2 %v1107_v16, %s1610_s29  ;;  %s1614_s29 = smov 126  }
 0x230   : > { %v601_v20 = vpop.permute.xlu2 %600 }
 0x231   : > { %v602_v23 = vrot.slane %v601_v20, 4 }
 0x233   : > { %v604_v24 = vsel %vm603_vm15, %v602_v23, %v601_v20  ;;  %611 = vst.msk [vmem:[#allocation3 + $0x8] sm:$0xf] %vm610_vm0, %v602_v23 }
 0x234   : > { %609 = vst.msk [vmem:[#allocation3] sm:$0xff] %vm1823_vm1, %v604_v24 }
 0x238   : > { %v718_v45 = vpop.permute.xlu2 %717 }
 0x239   : > { %v719_v49 = vrot.slane %v718_v45, 4 }
 0x23a   : > { %v630_v31 = vld [vmem:[#allocation3 + $0x8] sm:$0xf] }
 0x23b   : > { %v1833_v33 = vld [vmem:[#allocation3] sm:$0xff]  ;;  %v646_v34 = vmul.f32 %v640_v27, %v630_v31  ;;  %v670_v36 = vld [vmem:[#allocation3 + $0x8] sm:$0xf]  ;;  %v720_v57 = vsel %vm603_vm15, %v719_v49, %v718_v45  ;;  %v942_v27 = vrot.slane %v941_v21, 4 }
 0x23c   : > { %v620_v35 = vmul.f32 %v618_v30, %v1833_v33  ;;  %935 = vst.msk [vmem:[#allocation3] sm:$0xff] %vm1823_vm1, %v932_v32  ;;  %v748_v37 = vld [vmem:[#allocation3 + $0x8] sm:$0xf]  ;;  %v686_v43 = vmul.f32 %v680_v41, %v670_v36  ;;  %v645_v46 = vmul.f32 %v642_v42, %v1833_v33  ;;  %v685_v53 = vmul.f32 %v682_v50, %v1833_v33 }
 0x23d   : > { %652 = vst [vmem:[#allocation1 + $0x11] ss:$2 sm:$0xff] %v646_v34  ;;  %v787_v38 = vld [vmem:[#allocation3 + $0x8] sm:$0xf]  ;;  %v764_v58 = vmul.f32 %v758_v56, %v748_v37  ;;  %v723_v61 = vmul.f32 %v720_v57, %v1833_v33  ;;  %v763_v8 = vmul.f32 %v760_v4, %v1833_v33  ;;  %vm838_vm1 = vcmask 48128  }
 0x23e   : > { %622 = vst [vmem:[#allocation1] ss:$2 sm:$0xff] %v620_v35  ;;  %v709_v1 = vld [vmem:[#allocation3 + $0x8] sm:$0xf]  ;;  %v803_v5 = vmul.f32 %v797_v2, %v787_v38  ;;  %v943_v35 = vsel %vm549_vm11, %v940_v26, %v942_v27  ;;  %v965_v42 = vsel %vm641_vm2, %v964_v18, %v963_v15  ;;  %vm701_vm2 = vcmask 1031168  }
 0x23f   : > { %v827_v40 = vld [vmem:[#allocation3 + $0x8] sm:$0xf]  ;;  %v724_v51 = vmul.f32 %v719_v49, %v709_v1  ;;  %v1036_v1 = vpop.permute.xlu0 %1035 }
 0x240   : > { %936 = vst.msk [vmem:[#allocation3 + $0x8] sm:$0xf] %vm610_vm0, %v931_v29  ;;  %v836_v6 = vpop.permute.xlu2 %835  ;;  %vm798_vm0 = vcmask 39936   ;;  %v1037_v41 = vrot.slane %v1036_v1, 4 }
 0x241   : > { %v837_v10 = vrot.slane %v836_v6, 4  ;;  %v799_v11 = vsel %vm798_vm0, %v797_v2, %v796_v59 }
 0x242   : > { %v802_v16 = vmul.f32 %v799_v11, %v1833_v33 }
 0x243   : > { %v843_v12 = vmul.f32 %v837_v10, %v827_v40  ;;  %v839_v23 = vsel %vm838_vm1, %v837_v10, %v836_v6 }
 0x244   : > { %v655_v44 = vld.sshfl [vmem:[#allocation1 + $0x10] sm:$0xff pattern:$0x75316420]  ;;  %v842_v25 = vmul.f32 %v839_v23, %v1833_v33 }
 0x245   : > { %691 = vst [vmem:[#allocation1 + $0x10] ss:$2 sm:$0xff] %v686_v43  ;;  %660 = vrot.lane.b32.xlu0 %v655_v44, %s1613_s25  ;;  %v623_v47 = vld.sshfl [vmem:[#allocation1] sm:$0xff pattern:$0x75316420]  ;;  %v1871_v33 = vld [vmem:[#allocation3] sm:$0xff] }
 0x246   : > { %v624_v48 = vld.sshfl [vmem:[#allocation1 + $0x8] sm:$0xff pattern:$0x75316420]  ;;  %627 = vst [vmem:[#allocation4 + $0x30] sm:$0xf] %v623_v47  ;;  %v945_v37 = vmul.f32 %v943_v35, %v1871_v33  ;;  %v968_v45 = vmul.f32 %v965_v42, %v1871_v33 }
 0x247   : > { %650 = vst [vmem:[#allocation1 + $0x1] ss:$2 sm:$0xff] %v645_v46  ;;  %v955_v17 = vld [vmem:[#allocation3 + $0x8] sm:$0xf]  ;;  %v1073_v46 = vpop.permute.xlu1 %1072  ;;  %v1146_v2 = vpop.permute.xlu0 %1145 }
 0x248   : > { %628 = vst [vmem:[#allocation4] sm:$0xf] %v624_v48  ;;  %v969_v22 = vmul.f32 %v964_v18, %v955_v17  ;;  %v992_v28 = vld [vmem:[#allocation3 + $0x8] sm:$0xf]  ;;  %v1000_v29 = vpop.permute.xlu2 %999  ;;  %v1074_v50 = vrot.slane %v1073_v46, 4 }
 0x249   : > { %v1001_v32 = vrot.slane %v1000_v29, 4  ;;  %v1028_v40 = vld [vmem:[#allocation3 + $0x8] sm:$0xf] }
 0x24a   : > { %v1042_v43 = vmul.f32 %v1037_v41, %v1028_v40  ;;  %v1065_v49 = vld [vmem:[#allocation3 + $0x8] sm:$0xf] }
 0x24b   : > { %v1006_v34 = vmul.f32 %v1001_v32, %v992_v28  ;;  %v1138_v6 = vld [vmem:[#allocation3 + $0x8] sm:$0xf] }
 0x24c   : > { %v694_v52 = vld.sshfl [vmem:[#allocation1 + $0x10] sm:$0xff pattern:$0x75316420] }
 0x24d   : > { %730 = vst [vmem:[#allocation1 + $0x11] ss:$2 sm:$0xff] %v724_v51  ;;  %699 = vrot.lane.b32.xlu0 %v694_v52, %s1614_s29  ;;  %v1002_v51 = vsel %vm681_vm13, %v1001_v32, %v1000_v29  ;;  %v1079_v52 = vmul.f32 %v1074_v50, %v1065_v49  ;;  %vm819_vm13 = vcmask 1006592  }
 0x24e   : > { %v654_v54 = vld.sshfl [vmem:[#allocation1 + $0x8] sm:$0xff pattern:$0x75316420]  ;;  %v653_v55 = vld.sshfl [vmem:[#allocation1] sm:$0xff pattern:$0x75316420] }
 0x24f   : > { %658 = vrot.lane.b32.xlu2 %v654_v54, %s1613_s25  ;;  %689 = vst [vmem:[#allocation1] ss:$2 sm:$0xff] %v685_v53  ;;  %v1005_v54 = vmul.f32 %v1002_v51, %v1871_v33 }
 0x254   : > { %v733_v60 = vld.sshfl [vmem:[#allocation1 + $0x10] sm:$0xff pattern:$0x75316420] }
 0x255   : > { %656 = vrot.lane.b32.xlu0 %v653_v55, %s1613_s25  ;;  %769 = vst [vmem:[#allocation1 + $0x10] ss:$2 sm:$0xff] %v764_v58  ;;  %v1109_v55 = vpop.permute.xlu2 %1108  ;;  %v1101_v58 = vld [vmem:[#allocation3 + $0x8] sm:$0xf] }
 0x256   : > { %v692_v62 = vld.sshfl [vmem:[#allocation1] sm:$0xff pattern:$0x75316420]  ;;  %v693_v63 = vld.sshfl [vmem:[#allocation1 + $0x8] sm:$0xff pattern:$0x75316420] }
 0x257   : > { %695 = vrot.lane.b32.xlu1 %v692_v62, %s1614_s29  ;;  %738 = vrot.lane.b32.xlu2 %v733_v60, %s1615_s15  ;;  %728 = vst [vmem:[#allocation1 + $0x1] ss:$2 sm:$0xff] %v723_v61  ;;  %v1110_v59 = vrot.slane %v1109_v55, 4  ;;  %v1038_v60 = vsel %vm603_vm15, %v1037_v41, %v1036_v1  ;;  %vm662_vm15 = vcmask 1039360  }
 0x259   : > { %v1115_v61 = vmul.f32 %v1110_v59, %v1101_v58  ;;  %v1111_v13 = vsel %vm798_vm0, %v1110_v59, %v1109_v55  ;;  %vm779_vm0 = vcmask 1014784  }
 0x25a   : > { %v1114_v15 = vmul.f32 %v1111_v13, %v1871_v33 }
 0x25c   : > { %v772_v7 = vld.sshfl [vmem:[#allocation1 + $0x10] sm:$0xff pattern:$0x75316420] }
 0x25d   : > { %809 = vst [vmem:[#allocation1 + $0x11] ss:$2 sm:$0xff] %v803_v5 }
 0x25e   : > { %v732_v9 = vld.sshfl [vmem:[#allocation1 + $0x8] sm:$0xff pattern:$0x75316420]  ;;  %v731_v0 = vld.sshfl [vmem:[#allocation1] sm:$0xff pattern:$0x75316420] }
 0x25f   : > { %697 = vrot.lane.b32.xlu2 %v693_v63, %s1614_s29  ;;  %777 = vrot.lane.b32.xlu1 %v772_v7, %s1616_s24  ;;  %767 = vst [vmem:[#allocation1] ss:$2 sm:$0xff] %v763_v8  ;;  %v1041_v63 = vmul.f32 %v1038_v60, %v1871_v33  ;;  %v1147_v7 = vrot.slane %v1146_v2, 4  ;;  %v1075_v8 = vsel %vm759_vm14, %v1074_v50, %v1073_v46  ;;  %vm740_vm14 = vcmask 1022976  }
 0x260   : > { %v1078_v10 = vmul.f32 %v1075_v8, %v1871_v33 }
 0x261   : > { %v1148_v18 = vsel %vm838_vm1, %v1147_v7, %v1146_v2  ;;  %vm858_vm1 = vcmask 998400  }
 0x264   : > { %v812_v14 = vld.sshfl [vmem:[#allocation1 + $0x10] sm:$0xff pattern:$0x75316420] }
 0x265   : > { %817 = vrot.lane.b32.xlu0 %v812_v14, %s1617_s12  ;;  %848 = vst [vmem:[#allocation1 + $0x10] ss:$2 sm:$0xff] %v843_v12 }
 0x266   : > { %v770_v19 = vld.sshfl [vmem:[#allocation1] sm:$0xff pattern:$0x75316420]  ;;  %v771_v20 = vld.sshfl [vmem:[#allocation1 + $0x8] sm:$0xff pattern:$0x75316420] }
 0x267   : > { %736 = vrot.lane.b32.xlu1 %v732_v9, %s1615_s15  ;;  %734 = vrot.lane.b32.xlu2 %v731_v0, %s1615_s15  ;;  %807 = vst [vmem:[#allocation1 + $0x1] ss:$2 sm:$0xff] %v802_v16  ;;  %v1152_v9 = vmul.f32 %v1147_v7, %v1138_v6 }
 0x26c   : > { %v851_v24 = vld.sshfl [vmem:[#allocation1 + $0x10] sm:$0xff pattern:$0x75316420] }
 0x26d   : > { %775 = vrot.lane.b32.xlu0 %v771_v20, %s1616_s24  ;;  %975 = vst [vmem:[#allocation1 + $0x11] ss:$2 sm:$0xff] %v969_v22 }
 0x26e   : > { %v810_v30 = vld.sshfl [vmem:[#allocation1] sm:$0xff pattern:$0x75316420]  ;;  %v811_v31 = vld.sshfl [vmem:[#allocation1 + $0x8] sm:$0xff pattern:$0x75316420] }
 0x26f   : > { %813 = vrot.lane.b32.xlu1 %v810_v30, %s1617_s12  ;;  %856 = vrot.lane.b32.xlu2 %v851_v24, %s1618_s26  ;;  %846 = vst [vmem:[#allocation1] ss:$2 sm:$0xff] %v842_v25 }
 0x274   : > { %v978_v36 = vld.sshfl [vmem:[#allocation1 + $0x10] sm:$0xff pattern:$0x75316420] }
 0x275   : > { %773 = vrot.lane.b32.xlu0 %v770_v19, %s1616_s24  ;;  %1011 = vst [vmem:[#allocation1 + $0x10] ss:$2 sm:$0xff] %v1006_v34  ;;  %v1151_v19 = vmul.f32 %v1148_v18, %v1871_v33  ;;  %v1182_v34 = vld [vmem:[%s2023_s6] sm:$0xf] }
 0x276   : > { %v850_v38 = vld.sshfl [vmem:[#allocation1 + $0x8] sm:$0xff pattern:$0x75316420]  ;;  %v849_v39 = vld.sshfl [vmem:[#allocation1] sm:$0xff pattern:$0x75316420] }
 0x277   : > { %815 = vrot.lane.b32.xlu2 %v811_v31, %s1617_s12  ;;  %854 = vrot.lane.b32.xlu1 %v850_v38, %s1618_s26  ;;  %947 = vst [vmem:[#allocation1] ss:$2 sm:$0xff] %v945_v37 }
 0x27c   : > { %v1014_v44 = vld.sshfl [vmem:[#allocation1 + $0x10] sm:$0xff pattern:$0x75316420] }
 0x27d   : > { %983 = vrot.lane.b32.xlu0 %v978_v36, %s1613_s25  ;;  %1048 = vst [vmem:[#allocation1 + $0x11] ss:$2 sm:$0xff] %v1042_v43 }
 0x27e   : > { %v1880_v47 = vld.sshfl [vmem:[#allocation1] sm:$0xff pattern:$0x75316420]  ;;  %v1882_v48 = vld.sshfl [vmem:[#allocation1 + $0x8] sm:$0xff pattern:$0x75316420] }
 0x27f   : > { %852 = vrot.lane.b32.xlu1 %v849_v39, %s1618_s26  ;;  %973 = vst [vmem:[#allocation1 + $0x1] ss:$2 sm:$0xff] %v968_v45 }
 0x284   : > { %v1051_v53 = vld.sshfl [vmem:[#allocation1 + $0x10] sm:$0xff pattern:$0x75316420] }
 0x285   : > { %1019 = vrot.lane.b32.xlu0 %v1014_v44, %s1614_s29  ;;  %1056 = vrot.lane.b32.xlu2 %v1051_v53, %s1615_s15  ;;  %1084 = vst [vmem:[#allocation1 + $0x10] ss:$2 sm:$0xff] %v1079_v52 }
 0x286   : > { %v977_v56 = vld.sshfl [vmem:[#allocation1 + $0x8] sm:$0xff pattern:$0x75316420]  ;;  %v976_v57 = vld.sshfl [vmem:[#allocation1] sm:$0xff pattern:$0x75316420] }
 0x287   : > { %1009 = vst [vmem:[#allocation1] ss:$2 sm:$0xff] %v1005_v54 }
 0x28c   : > { %v1087_v62 = vld.sshfl [vmem:[#allocation1 + $0x10] sm:$0xff pattern:$0x75316420] }
 0x28d   : > { %981 = vrot.lane.b32.xlu2 %v977_v56, %s1613_s25  ;;  %1092 = vrot.lane.b32.xlu1 %v1087_v62, %s1616_s24  ;;  %1121 = vst [vmem:[#allocation1 + $0x11] ss:$2 sm:$0xff] %v1115_v61 }
 0x28e   : > { %v1013_v4 = vld.sshfl [vmem:[#allocation1 + $0x8] sm:$0xff pattern:$0x75316420]  ;;  %v1012_v5 = vld.sshfl [vmem:[#allocation1] sm:$0xff pattern:$0x75316420] }
 0x28f   : > { %1046 = vst [vmem:[#allocation1 + $0x1] ss:$2 sm:$0xff] %v1041_v63 }
 0x294   : > { %v1124_v0 = vld.sshfl [vmem:[#allocation1 + $0x10] sm:$0xff pattern:$0x75316420] }
 0x295   : > { %1017 = vrot.lane.b32.xlu2 %v1013_v4, %s1614_s29  ;;  %1129 = vrot.lane.b32.xlu0 %v1124_v0, %s1617_s12  ;;  %1157 = vst [vmem:[#allocation1 + $0x10] ss:$2 sm:$0xff] %v1152_v9 }
 0x296   : > { %v1050_v11 = vld.sshfl [vmem:[#allocation1 + $0x8] sm:$0xff pattern:$0x75316420]  ;;  %v1049_v12 = vld.sshfl [vmem:[#allocation1] sm:$0xff pattern:$0x75316420] }
 0x297   : > { %1054 = vrot.lane.b32.xlu1 %v1050_v11, %s1615_s15  ;;  %1082 = vst [vmem:[#allocation1] ss:$2 sm:$0xff] %v1078_v10 }
 0x29c   : > { %v1160_v14 = vld.sshfl [vmem:[#allocation1 + $0x10] sm:$0xff pattern:$0x75316420] }
 0x29d   : > { %1165 = vrot.lane.b32.xlu2 %v1160_v14, %s1618_s26 }
 0x29e   : > { %v1086_v16 = vld.sshfl [vmem:[#allocation1 + $0x8] sm:$0xff pattern:$0x75316420]  ;;  %v1085_v17 = vld.sshfl [vmem:[#allocation1] sm:$0xff pattern:$0x75316420] }
 0x29f   : > { %1090 = vrot.lane.b32.xlu0 %v1086_v16, %s1616_s24  ;;  %1119 = vst [vmem:[#allocation1 + $0x1] ss:$2 sm:$0xff] %v1114_v15 }
 0x2a6   : > { %v1123_v20 = vld.sshfl [vmem:[#allocation1 + $0x8] sm:$0xff pattern:$0x75316420]  ;;  %v1122_v21 = vld.sshfl [vmem:[#allocation1] sm:$0xff pattern:$0x75316420] }
 0x2a7   : > { %1088 = vrot.lane.b32.xlu0 %v1085_v17, %s1616_s24  ;;  %1127 = vrot.lane.b32.xlu2 %v1123_v20, %s1617_s12  ;;  %1155 = vst [vmem:[#allocation1] ss:$2 sm:$0xff] %v1151_v19  ;;  %s2036_s24 = sshll.u32 %s2038_s14, 3 }
 0x2a8   : > { %1125 = vrot.lane.b32.xlu1 %v1122_v21, %s1617_s12  ;;  %s359_s12 = scalar_lea.vmem %s2027_s10, %s2036_s24 }
 0x2a9   : > { %v659_v22 = vpop.permute.xlu2 %658 }
 0x2ae   : > { %v1159_v23 = vld.sshfl [vmem:[#allocation1 + $0x8] sm:$0xff pattern:$0x75316420]  ;;  %v1158_v25 = vld.sshfl [vmem:[#allocation1] sm:$0xff pattern:$0x75316420] }
 0x2af   : > { %979 = vrot.lane.b32.xlu0 %v976_v57, %s1613_s25  ;;  %1052 = vrot.lane.b32.xlu2 %v1049_v12, %s1615_s15 }
 0x2b0   : > { %1163 = vrot.lane.b32.xlu1 %v1159_v23, %s1618_s26 }
 0x2b1   : > { %v739_v24 = vpop.permute.xlu2 %738 }
 0x2b7   : > { %v661_v26 = vpop.permute.xlu0 %660 }
 0x2b8   : > { %1161 = vrot.lane.b32.xlu1 %v1158_v25, %s1618_s26  ;;  %v664_v27 = vsel %vm662_vm15, %v659_v22, %v661_v26 }
 0x2b9   : > { %668 = vst [vmem:[#allocation4] sm:$0xf0] %v664_v27  ;;  %v698_v28 = vpop.permute.xlu2 %697 }
 0x2bf   : > { %v700_v29 = vpop.permute.xlu0 %699 }
 0x2c0   : > { %1015 = vrot.lane.b32.xlu1 %v1012_v5, %s1614_s29  ;;  %v703_v30 = vsel %vm701_vm2, %v698_v28, %v700_v29  ;;  %v867_v31 = vld [vmem:[#allocation4] sm:$0xff] }
 0x2c1   : > { %707 = vst [vmem:[#allocation4 + $0x10] sm:$0xf] %v703_v30  ;;  %v735_v32 = vpop.permute.xlu2 %734 }
 0x2c2   : > { %953 = vst [vmem:[#allocation4] sm:$0xf] %v1882_v48 }
 0x2c7   : > { %v657_v35 = vpop.permute.xlu0 %656 }
 0x2c8   : > { %1185 = vperm.xlu1 %1589, %v1182_v34   ;;  %v663_v33 = vsel %vm662_vm15, %v657_v35, %v659_v22 }
 0x2c9   : > { %667 = vst [vmem:[#allocation4 + $0x30] sm:$0xf0] %v663_v33  ;;  %v696_v36 = vpop.permute.xlu1 %695  ;;  %v857_v38 = vpop.permute.xlu2 %856 }
 0x2ca   : > { %v702_v37 = vsel %vm701_vm2, %v696_v36, %v698_v28 }
 0x2cb   : > { %706 = vst [vmem:[#allocation4 + $0x18] sm:$0xf] %v702_v37 }
 0x2d0   : > { %v866_v39 = vld [vmem:[#allocation4 + $0x30] sm:$0xff] }
 0x2d1   : > { %v778_v1 = vpop.permute.xlu1 %777  ;;  %952 = vst [vmem:[#allocation4 + $0x30] sm:$0xf] %v1880_v47  ;;  %v816_v40 = vpop.permute.xlu2 %815 }
 0x2d7   : > { %v818_v41 = vpop.permute.xlu0 %817 }
 0x2d8   : > { %v821_v42 = vsel %vm819_vm13, %v816_v40, %v818_v41 }
 0x2d9   : > { %825 = vst [vmem:[#allocation4 + $0x20] sm:$0xf0] %v821_v42  ;;  %v737_v43 = vpop.permute.xlu1 %736 }
 0x2da   : > { %v741_v44 = vsel %vm740_vm14, %v735_v32, %v737_v43  ;;  %v742_v45 = vsel %vm740_vm14, %v737_v43, %v739_v24 }
 0x2db   : > { %745 = vst [vmem:[#allocation4 + $0x18] sm:$0xf0] %v741_v44 }
 0x2dc   : > { %746 = vst [vmem:[#allocation4 + $0x10] sm:$0xf0] %v742_v45 }
 0x2df   : > { %v776_v46 = vpop.permute.xlu0 %775  ;;  %v1057_v48 = vpop.permute.xlu2 %1056 }
 0x2e0   : > { %v781_v49 = vsel %vm779_vm0, %v776_v46, %v778_v1 }
 0x2e1   : > { %785 = vst [vmem:[#allocation4 + $0x20] sm:$0xf] %v781_v49  ;;  %v814_v47 = vpop.permute.xlu1 %813 }
 0x2e2   : > { %v820_v50 = vsel %vm819_vm13, %v814_v47, %v816_v40  ;;  %v868_v8 = vld [vmem:[#allocation4 + $0x18] sm:$0xff] }
 0x2e3   : > { %824 = vst [vmem:[#allocation4 + $0x8] sm:$0xf0] %v820_v50  ;;  %v869_v63 = vld [vmem:[#allocation4 + $0x10] sm:$0xff] }
 0x2e7   : > { %v774_v51 = vpop.permute.xlu0 %773  ;;  %v982_v52 = vpop.permute.xlu2 %981 }
 0x2e8   : > { %v780_v53 = vsel %vm779_vm0, %v774_v51, %v776_v46  ;;  %v871_v62 = vld [vmem:[#allocation4 + $0x20] sm:$0xff] }
 0x2e9   : > { %784 = vst [vmem:[#allocation4 + $0x8] sm:$0xf] %v780_v53  ;;  %v855_v54 = vpop.permute.xlu1 %854 }
 0x2ea   : > { %v860_v55 = vsel %vm858_vm1, %v855_v54, %v857_v38 }
 0x2eb   : > { %864 = vst [vmem:[#allocation4 + $0x38] sm:$0xf] %v860_v55 }
 0x2ef   : > { %v984_v56 = vpop.permute.xlu0 %983  ;;  %v1928_v57 = vpop.permute.xlu2 %1017 }
 0x2f0   : > { %v986_v58 = vsel %vm662_vm15, %v982_v52, %v984_v56  ;;  %v870_v7 = vld [vmem:[#allocation4 + $0x8] sm:$0xff] }
 0x2f1   : > { %990 = vst [vmem:[#allocation4] sm:$0xf0] %v986_v58  ;;  %v853_v59 = vpop.permute.xlu1 %852 }
 0x2f2   : > { %v859_v60 = vsel %vm858_vm1, %v853_v59, %v855_v54  ;;  %v873_v61 = vld [vmem:[#allocation4 + $0x38] sm:$0xf] }
 0x2f3   : > { %863 = vst [vmem:[#allocation4 + $0x28] sm:$0xf] %v859_v60  ;;  %1541 = vmatpush.msk.msra.mxu3 %vm549_vm11, %v873_v61 }
 0x2f5   : > { %922 = vmatpush.msra.mxu3 %v871_v62 }
 0x2f7   : > { %923 = vmatpush.msra.mxu3 %v869_v63  ;;  %v1020_v2 = vpop.permute.xlu0 %1019  ;;  %v1166_v4 = vpop.permute.xlu2 %1165 }
 0x2f8   : > { %v1022_v5 = vsel %vm701_vm2, %v1928_v57, %v1020_v2  ;;  %v1175_v32 = vld [vmem:[#allocation4] sm:$0xff] }
 0x2f9   : > { %1026 = vst [vmem:[#allocation4 + $0x10] sm:$0xf] %v1022_v5  ;;  %924 = vmatpush.msra.mxu3 %v867_v31  ;;  %v1173_v31 = vld [vmem:[%s2022_s5] sm:$0xf] }
 0x2fa   : > { %v872_v6 = vld [vmem:[#allocation4 + $0x28] sm:$0xf] }
 0x2fb   : > { %1539 = vmatpush.msk.msra.mxu2 %vm549_vm11, %v872_v6 }
 0x2fd   : > { %902 = vmatpush.msra.mxu2 %v870_v7 }
 0x2ff   : > { %903 = vmatpush.msra.mxu2 %v868_v8  ;;  %v1093_v9 = vpop.permute.xlu1 %1092 }
 0x301   : > { %904 = vmatpush.msra.mxu2 %v866_v39  ;;  %v1128_v0 = vpop.permute.xlu2 %1127 }
 0x307   : > { %v1130_v10 = vpop.permute.xlu0 %1129 }
 0x308   : > { %v1132_v11 = vsel %vm819_vm13, %v1128_v0, %v1130_v10 }
 0x309   : > { %1136 = vst [vmem:[#allocation4 + $0x20] sm:$0xf0] %v1132_v11  ;;  %v1055_v12 = vpop.permute.xlu1 %1054  ;;  %v1053_v13 = vpop.permute.xlu2 %1052 }
 0x30a   : > { %v1059_v14 = vsel %vm740_vm14, %v1055_v12, %v1057_v48  ;;  %v1058_v15 = vsel %vm740_vm14, %v1053_v13, %v1055_v12  ;;  %v1402_v12 = vld [vmem:[%s2025_s8] sm:$0xf] }
 0x30b   : > { %1063 = vst [vmem:[#allocation4 + $0x10] sm:$0xf0] %v1059_v14 }
 0x30c   : > { %1062 = vst [vmem:[#allocation4 + $0x18] sm:$0xf0] %v1058_v15 }
 0x311   : > { %v1091_v16 = vpop.permute.xlu0 %1090 }
 0x312   : > { %v1095_v17 = vsel %vm779_vm0, %v1091_v16, %v1093_v9  ;;  %v1177_v30 = vld [vmem:[#allocation4 + $0x10] sm:$0xff] }
 0x313   : > { %1099 = vst [vmem:[#allocation4 + $0x20] sm:$0xf] %v1095_v17 }
 0x319   : > { %v1089_v18 = vpop.permute.xlu0 %1088 }
 0x31a   : > { %v1094_v19 = vsel %vm779_vm0, %v1089_v18, %v1091_v16  ;;  %v1126_v20 = vpop.permute.xlu1 %1125  ;;  %v1179_v29 = vld [vmem:[#allocation4 + $0x20] sm:$0xff] }
 0x31b   : > { %1098 = vst [vmem:[#allocation4 + $0x8] sm:$0xf] %v1094_v19  ;;  %v1131_v21 = vsel %vm819_vm13, %v1126_v20, %v1128_v0 }
 0x31c   : > { %1135 = vst [vmem:[#allocation4 + $0x8] sm:$0xf0] %v1131_v21 }
 0x321   : > { %v980_v22 = vpop.permute.xlu0 %979 }
 0x322   : > { %v985_v23 = vsel %vm662_vm15, %v980_v22, %v982_v52  ;;  %v1164_v24 = vpop.permute.xlu1 %1163 }
 0x323   : > { %989 = vst [vmem:[#allocation4 + $0x30] sm:$0xf0] %v985_v23  ;;  %v1168_v25 = vsel %vm858_vm1, %v1164_v24, %v1166_v4  ;;  %v1178_v36 = vld [vmem:[#allocation4 + $0x8] sm:$0xff] }
 0x324   : > { %1172 = vst [vmem:[#allocation4 + $0x38] sm:$0xf] %v1168_v25 }
 0x32a   : > { %v1162_v26 = vpop.permute.xlu1 %1161  ;;  %v1174_v38 = vld [vmem:[#allocation4 + $0x30] sm:$0xff] }
 0x32b   : > { %v1167_v27 = vsel %vm858_vm1, %v1162_v26, %v1164_v24  ;;  %v1181_v28 = vld [vmem:[#allocation4 + $0x38] sm:$0xf]  ;;  %v865_v26 = vld [vmem:[%s2020_s3] sm:$0xf] }
 0x32c   : > { %1171 = vst [vmem:[#allocation4 + $0x28] sm:$0xf] %v1167_v27  ;;  %1551 = vmatpush.msk.msrb.mxu1 %vm549_vm11, %v1181_v28  ;;  %1542 = vmatmul.msk.f32.vlgmr.msra.gmra.mxu3 %vm545_vm12, %v865_v26 }
 0x32d   : > { %1540 = vmatmul.msk.f32.vlgmr.msra.gmra.mxu2 %vm545_vm12, %v865_v26 }
 0x32e   : > { %1230 = vmatpush.msrb.mxu1 %v1179_v29 }
 0x330   : > { %1231 = vmatpush.msrb.mxu1 %v1177_v30 }
 0x332   : > { %v1016_v34 = vpop.permute.xlu1 %1015  ;;  %1232 = vmatpush.msrb.mxu1 %v1175_v32 }
 0x333   : > { %v1021_v35 = vsel %vm701_vm2, %v1016_v34, %v1928_v57  ;;  %1552 = vmatmul.msk.f32.vlgmr.msrb.gmra.mxu1 %vm545_vm12, %v1173_v31  ;;  %v1180_v33 = vld [vmem:[#allocation4 + $0x28] sm:$0xf]  ;;  %v874_v34 = vld [vmem:[%s2021_s4] sm:$0xf] }
 0x334   : > { %1025 = vst [vmem:[#allocation4 + $0x18] sm:$0xf] %v1021_v35  ;;  %1549 = vmatpush.msk.msrb.mxu0 %vm549_vm11, %v1180_v33 }
 0x336   : > { %1210 = vmatpush.msrb.mxu0 %v1178_v36 }
 0x33a   : > { %v1186_v1 = vpop.permute.xlu1 %1185 }
 0x33b   : > { %v1176_v37 = vld [vmem:[#allocation4 + $0x18] sm:$0xff] }
 0x33c   : > { %1211 = vmatpush.msrb.mxu0 %v1176_v37 }
 0x33e   : > { %1212 = vmatpush.msrb.mxu0 %v1174_v38 }
 0x33f   : > { %1550 = vmatmul.msk.f32.vlgmr.msrb.gmra.mxu0 %vm545_vm12, %v1173_v31 }
 0x3b0   : > { %v1234_v39 = vpop.f32.mrf.mxu1 }
 0x3b1   : > { %v1235_v40 = vadd.f32 %v1234_v39, %v1186_v1 }
 0x3b3   : > { %v1239_v42 = vrot.slane %v1235_v40, 4 }
 0x3bc   : > { %v1214_v41 = vpop.f32.mrf.mxu0 }
 0x3bd   : > { %v1215_v43 = vadd.f32 %v1214_v41, %v1186_v1 }
 0x3bf   : > { %v1240_v44 = vsel %vm549_vm11, %v1215_v43, %v1239_v42 }
 0x3c0   : > { %1241 = vrot.lane.b32.xlu2 %v1240_v44, %s1600_s19 }
 0x41a   : > { %v1242_v45 = vpop.permute.xlu2 %1241 }
 0x41b   : > { %v1243_v46 = vrot.slane %v1242_v45, 4 }
 0x41d   : > { %v1244_v48 = vsel %vm371_vm3, %v1243_v46, %v1242_v45  ;;  %1248 = vst.msk [vmem:[#allocation2 + $0x8] sm:$0xf] %vm379_vm4, %v1243_v46  ;;  %v1393_v45 = vld [vmem:[%s2024_s7] sm:$0xf] }
 0x41e   : > { %1247 = vst.msk [vmem:[#allocation2] sm:$0xff] %vm1698_vm5, %v1244_v48 }
 0x424   : > { %v1259_v49 = vld [vmem:[#allocation2 + $0x8] sm:$0xf] }
 0x425   : > { %v1249_v47 = vld [vmem:[#allocation2] sm:$0xff]  ;;  %1265 = vst [vmem:[#allocation1 + $0x11] ss:$2 sm:$0xff] %v1259_v49  ;;  %v1282_v53 = vld [vmem:[#allocation2 + $0x8] sm:$0xf] }
 0x426   : > { %1251 = vst [vmem:[#allocation1] ss:$2 sm:$0xff] %v1249_v47  ;;  %v1304_v3 = vld [vmem:[#allocation2 + $0x8] sm:$0xf] }
 0x427   : > { %v1327_v59 = vld [vmem:[#allocation2 + $0x8] sm:$0xf] }
 0x428   : > { %v1349_v63 = vld [vmem:[#allocation2 + $0x8] sm:$0xf] }
 0x429   : > { %v1372_v6 = vld [vmem:[#allocation2 + $0x8] sm:$0xf] }
 0x42c   : > { %v1268_v52 = vld.sshfl [vmem:[#allocation1 + $0x10] sm:$0xff pattern:$0x75316420] }
 0x42d   : > { %v1252_v50 = vld.sshfl [vmem:[#allocation1] sm:$0xff pattern:$0x75316420]  ;;  %v1253_v51 = vld.sshfl [vmem:[#allocation1 + $0x8] sm:$0xff pattern:$0x75316420]  ;;  %1273 = vrot.lane.b32.xlu2 %v1268_v52, %s1601_s20 }
 0x42e   : > { %1263 = vst [vmem:[#allocation1 + $0x1] ss:$2 sm:$0xff] %v1249_v47 }
 0x42f   : > { %1256 = vst [vmem:[#allocation4 + $0x30] sm:$0xf] %v1252_v50 }
 0x430   : > { %1257 = vst [vmem:[#allocation4] sm:$0xf] %v1253_v51 }
 0x431   : > { %1287 = vst [vmem:[#allocation1 + $0x10] ss:$2 sm:$0xff] %v1282_v53  ;;  %v926_v53 = vpop.f32.mrf.mxu3 }
 0x435   : > { %v1266_v54 = vld.sshfl [vmem:[#allocation1] sm:$0xff pattern:$0x75316420]  ;;  %v1267_v55 = vld.sshfl [vmem:[#allocation1 + $0x8] sm:$0xff pattern:$0x75316420] }
 0x436   : > { %1285 = vst [vmem:[#allocation1] ss:$2 sm:$0xff] %v1249_v47  ;;  %1271 = vrot.lane.b32.xlu1 %v1267_v55, %s1601_s20 }
 0x438   : > { %v1290_v56 = vld.sshfl [vmem:[#allocation1 + $0x10] sm:$0xff pattern:$0x75316420] }
 0x439   : > { %1295 = vrot.lane.b32.xlu2 %v1290_v56, %s1602_s21  ;;  %1310 = vst [vmem:[#allocation1 + $0x11] ss:$2 sm:$0xff] %v1304_v3 }
 0x43d   : > { %v1288_v57 = vld.sshfl [vmem:[#allocation1] sm:$0xff pattern:$0x75316420]  ;;  %v1289_v58 = vld.sshfl [vmem:[#allocation1 + $0x8] sm:$0xff pattern:$0x75316420] }
 0x43e   : > { %1308 = vst [vmem:[#allocation1 + $0x1] ss:$2 sm:$0xff] %v1249_v47 }
 0x440   : > { %v1313_v60 = vld.sshfl [vmem:[#allocation1 + $0x10] sm:$0xff pattern:$0x75316420] }
 0x441   : > { %1318 = vrot.lane.b32.xlu1 %v1313_v60, %s1603_s22  ;;  %1332 = vst [vmem:[#allocation1 + $0x10] ss:$2 sm:$0xff] %v1327_v59 }
 0x445   : > { %v1311_v61 = vld.sshfl [vmem:[#allocation1] sm:$0xff pattern:$0x75316420]  ;;  %v1312_v62 = vld.sshfl [vmem:[#allocation1 + $0x8] sm:$0xff pattern:$0x75316420] }
 0x446   : > { %1330 = vst [vmem:[#allocation1] ss:$2 sm:$0xff] %v1249_v47 }
 0x448   : > { %v1335_v2 = vld.sshfl [vmem:[#allocation1 + $0x10] sm:$0xff pattern:$0x75316420] }
 0x449   : > { %1340 = vrot.lane.b32.xlu0 %v1335_v2, %s1604_s23  ;;  %1355 = vst [vmem:[#allocation1 + $0x11] ss:$2 sm:$0xff] %v1349_v63  ;;  %1293 = vrot.lane.b32.xlu1 %v1289_v58, %s1602_s21 }
 0x44d   : > { %v1333_v4 = vld.sshfl [vmem:[#allocation1] sm:$0xff pattern:$0x75316420]  ;;  %v1334_v5 = vld.sshfl [vmem:[#allocation1 + $0x8] sm:$0xff pattern:$0x75316420] }
 0x44e   : > { %1353 = vst [vmem:[#allocation1 + $0x1] ss:$2 sm:$0xff] %v1249_v47 }
 0x450   : > { %v1358_v7 = vld.sshfl [vmem:[#allocation1 + $0x10] sm:$0xff pattern:$0x75316420] }
 0x451   : > { %1363 = vrot.lane.b32.xlu2 %v1358_v7, %s1600_s19  ;;  %1377 = vst [vmem:[#allocation1 + $0x10] ss:$2 sm:$0xff] %v1372_v6  ;;  %1316 = vrot.lane.b32.xlu0 %v1312_v62, %s1603_s22 }
 0x455   : > { %v1356_v8 = vld.sshfl [vmem:[#allocation1] sm:$0xff pattern:$0x75316420]  ;;  %v1357_v9 = vld.sshfl [vmem:[#allocation1 + $0x8] sm:$0xff pattern:$0x75316420] }
 0x456   : > { %1375 = vst [vmem:[#allocation1] ss:$2 sm:$0xff] %v1249_v47 }
 0x458   : > { %v1380_v0 = vld.sshfl [vmem:[#allocation1 + $0x10] sm:$0xff pattern:$0x75316420] }
 0x459   : > { %1385 = vrot.lane.b32.xlu1 %v1380_v0, %s2035_s28  ;;  %1338 = vrot.lane.b32.xlu2 %v1334_v5, %s1604_s23 }
 0x45a   : > { %1359 = vrot.lane.b32.xlu0 %v1356_v8, %s1600_s19 }
 0x45d   : > { %v1379_v10 = vld.sshfl [vmem:[#allocation1 + $0x8] sm:$0xff pattern:$0x75316420]  ;;  %v1378_v11 = vld.sshfl [vmem:[#allocation1] sm:$0xff pattern:$0x75316420] }
 0x461   : > { %1336 = vrot.lane.b32.xlu2 %v1333_v4, %s1604_s23  ;;  %1361 = vrot.lane.b32.xlu1 %v1357_v9, %s1600_s19 }
 0x462   : > { %1383 = vrot.lane.b32.xlu0 %v1379_v10, %s2035_s28 }
 0x469   : > { %1269 = vrot.lane.b32.xlu2 %v1266_v54, %s1601_s20  ;;  %1314 = vrot.lane.b32.xlu1 %v1311_v61, %s1603_s22  ;;  %v906_v54 = vpop.f32.mrf.mxu2 }
 0x46a   : > { %1381 = vrot.lane.b32.xlu0 %v1378_v11, %s2035_s28 }
 0x471   : > { %1405 = vperm.xlu1 %1589, %v1402_v12  }
 0x472   : > { %1291 = vrot.lane.b32.xlu0 %v1288_v57, %s1602_s21 }
 0x47a   : > { %877 = vperm.xlu0 %1590, %v874_v34  }
 0x487   : > { %v1274_v13 = vpop.permute.xlu2 %1273 }
 0x493   : > { %v1296_v14 = vpop.permute.xlu2 %1295 }
 0x4a8   : > { %v1272_v15 = vpop.permute.xlu1 %1271 }
 0x4a9   : > { %v1276_v16 = vsel %vm407_vm6, %v1272_v15, %v1274_v13 }
 0x4aa   : > { %1280 = vst [vmem:[#allocation4] sm:$0xf0] %v1276_v16 }
 0x4ab   : > { %v1364_v17 = vpop.permute.xlu2 %1363 }
 0x4b1   : > { %v1395_v46 = vld [vmem:[#allocation4] sm:$0xff] }
 0x4b3   : > { %v1339_v18 = vpop.permute.xlu2 %1338  ;;  %v1319_v19 = vpop.permute.xlu1 %1318 }
 0x4bb   : > { %v1341_v20 = vpop.permute.xlu0 %1340  ;;  %v1337_v21 = vpop.permute.xlu2 %1336 }
 0x4bc   : > { %v1343_v22 = vsel %vm477_vm9, %v1339_v18, %v1341_v20  ;;  %v1342_v23 = vsel %vm477_vm9, %v1337_v21, %v1339_v18  ;;  %v1294_v24 = vpop.permute.xlu1 %1293 }
 0x4bd   : > { %1347 = vst [vmem:[#allocation4 + $0x20] sm:$0xf] %v1343_v22  ;;  %v1298_v25 = vsel %vm430_vm7, %v1294_v24, %v1296_v14 }
 0x4be   : > { %1346 = vst [vmem:[#allocation4 + $0x8] sm:$0xf] %v1342_v23 }
 0x4bf   : > { %1302 = vst [vmem:[#allocation4 + $0x10] sm:$0xf] %v1298_v25 }
 0x4c3   : > { %v1317_v27 = vpop.permute.xlu0 %1316  ;;  %v1270_v28 = vpop.permute.xlu2 %1269 }
 0x4c4   : > { %v1321_v29 = vsel %vm454_vm8, %v1317_v27, %v1319_v19  ;;  %v1275_v30 = vsel %vm407_vm6, %v1270_v28, %v1272_v15 }
 0x4c5   : > { %1325 = vst [vmem:[#allocation4 + $0x10] sm:$0xf0] %v1321_v29 }
 0x4c6   : > { %1279 = vst [vmem:[#allocation4 + $0x30] sm:$0xf0] %v1275_v30 }
 0x4cb   : > { %v1386_v31 = vpop.permute.xlu1 %1385 }
 0x4cc   : > { %v1360_v32 = vpop.permute.xlu0 %1359  ;;  %v1397_v44 = vld [vmem:[#allocation4 + $0x10] sm:$0xff] }
 0x4cd   : > { %v1394_v52 = vld [vmem:[#allocation4 + $0x30] sm:$0xff] }
 0x4d3   : > { %v1362_v35 = vpop.permute.xlu1 %1361 }
 0x4d4   : > { %v1365_v33 = vsel %vm371_vm3, %v1360_v32, %v1362_v35  ;;  %v1366_v36 = vsel %vm371_vm3, %v1362_v35, %v1364_v17  ;;  %v1384_v37 = vpop.permute.xlu0 %1383 }
 0x4d5   : > { %1369 = vst [vmem:[#allocation4 + $0x8] sm:$0xf0] %v1365_v33  ;;  %v1388_v38 = vsel %vm523_vm10, %v1384_v37, %v1386_v31 }
 0x4d6   : > { %1370 = vst [vmem:[#allocation4 + $0x20] sm:$0xf0] %v1366_v36 }
 0x4d7   : > { %1392 = vst [vmem:[#allocation4 + $0x38] sm:$0xf] %v1388_v38 }
 0x4db   : > { %v1315_v39 = vpop.permute.xlu1 %1314 }
 0x4dc   : > { %v1320_v1 = vsel %vm454_vm8, %v1315_v39, %v1317_v27  ;;  %v1382_v40 = vpop.permute.xlu0 %1381  ;;  %v1398_v50 = vld [vmem:[#allocation4 + $0x8] sm:$0xff] }
 0x4dd   : > { %1324 = vst [vmem:[#allocation4 + $0x18] sm:$0xf0] %v1320_v1  ;;  %v1387_v41 = vsel %vm523_vm10, %v1382_v40, %v1384_v37  ;;  %v1399_v43 = vld [vmem:[#allocation4 + $0x20] sm:$0xff] }
 0x4de   : > { %1391 = vst [vmem:[#allocation4 + $0x28] sm:$0xf] %v1387_v41  ;;  %v1401_v42 = vld [vmem:[#allocation4 + $0x38] sm:$0xf] }
 0x4df   : > { %1555 = vmatpush.msk.msrb.mxu3 %vm549_vm11, %v1401_v42 }
 0x4e1   : > { %1450 = vmatpush.msrb.mxu3 %v1399_v43 }
 0x4e3   : > { %1451 = vmatpush.msrb.mxu3 %v1397_v44  ;;  %v1406_v56 = vpop.permute.xlu1 %1405 }
 0x4e4   : > { %v1292_v48 = vpop.permute.xlu0 %1291 }
 0x4e5   : > { %1452 = vmatpush.msrb.mxu3 %v1395_v46  ;;  %v1297_v49 = vsel %vm430_vm7, %v1292_v48, %v1294_v24  ;;  %v1400_v47 = vld [vmem:[#allocation4 + $0x28] sm:$0xf] }
 0x4e6   : > { %1301 = vst [vmem:[#allocation4 + $0x18] sm:$0xf] %v1297_v49  ;;  %1556 = vmatmul.msk.f32.vlgmr.msrb.gmra.mxu3 %vm545_vm12, %v1393_v45  ;;  %1553 = vmatpush.msk.msrb.mxu2 %vm549_vm11, %v1400_v47 }
 0x4e8   : > { %1430 = vmatpush.msrb.mxu2 %v1398_v50 }
 0x4ec   : > { %v878_v3 = vpop.permute.xlu0 %877 }
 0x4ed   : > { %v1396_v51 = vld [vmem:[#allocation4 + $0x18] sm:$0xff]  ;;  %v927_v58 = vadd.f32 %v926_v53, %v878_v3  ;;  %v907_v61 = vadd.f32 %v906_v54, %v878_v3 }
 0x4ee   : > { %1431 = vmatpush.msrb.mxu2 %v1396_v51 }
 0x4f0   : > { %1432 = vmatpush.msrb.mxu2 %v1394_v52 }
 0x4f1   : > { %1554 = vmatmul.msk.f32.vlgmr.msrb.gmra.mxu2 %vm545_vm12, %v1393_v45 }
 0x569   : > { %v1454_v55 = vpop.f32.mrf.mxu3 }
 0x56a   : > { %v1455_v57 = vadd.f32 %v1454_v55, %v1406_v56 }
 0x56c   : > { %v1458_v59 = vadd.f32 %v1455_v57, %v927_v58 }
 0x56e   : > { %v1461_v63 = vrot.slane %v1458_v59, 4 }
 0x574   : > { %v1434_v60 = vpop.f32.mrf.mxu2 }
 0x575   : > { %v1435_v62 = vadd.f32 %v1434_v60, %v1406_v56 }
 0x577   : > { %v1457_v2 = vadd.f32 %v1435_v62, %v907_v61 }
 0x579   : > { %v1462_v4 = vsel %vm549_vm11, %v1457_v2, %v1461_v63 }
 0x57a   : > { %1464 = vst [vmem:[%s359_s12] sm:$0xff] %v1462_v4 }
 0x57b PF: > { %s20_s13 = sadd.s32 1, %s1597_s13  }
 0x57c   : > { %p17_p4 = scmp.ge.s32.totalorder %s20_s13, 4  }
 0x57e   :  { %19 = sbr.rel (!%p17_p4) target bundleno = 1 (0x1), region = 132 }

</bundles_post_ra>
